<compile_context>
chip_gen: v5e
topology: v5e:2x2
jax: 0.10.0
libtpu: 0.0.40
codegen_flags: <defaults>
</compile_context>

<pallas_src>
import jax
import jax.numpy as jnp
from jax.experimental import pallas as pl
from jax.experimental.pallas import tpu as pltpu


def generator_kernel(scal_ref, x_ref, k_ref,
                     w1x_ref, w1g_ref, b1_ref, w2_ref, b2_ref, w3_ref, b3_ref,
                     out_ref):
    # Prefetched scalars (SMEM): [1 + ratio, ratio].
    one_plus_r = scal_ref[0]
    r = scal_ref[1]

    x = x_ref[...]                             # [tm, D] f32
    k = k_ref[...]                             # [tm, D] f32

    # generated = (1 + ratio) * x - ratio * k   (exact PyTorch formula, f32 VPU)
    gen = one_plus_r * x - r * k

    # MXU operands in bf16, accumulation in f32.
    x_bf = x.astype(jnp.bfloat16)
    # Store the passthrough slab early: frees x's vregs before the matmul
    # chain and lets the vector store overlap MXU work.
    out_ref[0] = x

    g_bf = gen.astype(jnp.bfloat16)

    # fc1 over the "concat" input, expressed as a split-K sum (no lane concat).
    h1 = (jnp.dot(x_bf, w1x_ref[...], preferred_element_type=jnp.float32)
          + jnp.dot(g_bf, w1g_ref[...], preferred_element_type=jnp.float32)
          + b1_ref[...])
    h1 = jnp.maximum(h1, 0.0).astype(jnp.bfloat16)

    h2 = jnp.dot(h1, w2_ref[...], preferred_element_type=jnp.float32) + b2_ref[...]
    h2 = jnp.maximum(h2, 0.0).astype(jnp.bfloat16)

    g = jnp.dot(h2, w3_ref[...], preferred_element_type=jnp.float32) + b3_ref[...]

    # out block is (2, tm, out_dim): slab 0 = x passthrough (stored above),
    # slab 1 = generated.
    out_ref[1] = g.astype(out_ref.dtype)


def _pick_batch_tile(B, max_tile=1024):
    """Generation-aware batch tile.

    Single-TC chips (v5e/v6e): largest tile that divides B (up to max_tile),
    ideally one grid step.  Multi-TC chips (v7x): largest tile giving an even
    grid length >= 2 so both TensorCores get work under 'parallel' semantics.
    Tiles are multiples of 8 (sublane alignment) unless the tile is B itself.
    """
    tiles = [t for t in range(8, min(B, max_tile) + 1, 8) if B % t == 0]
    if B <= max_tile:
        tiles.append(B)
    tiles = sorted(set(tiles))
    if not tiles:
        return B

    multi_tc = False
    try:
        kind = jax.devices()[0].device_kind.lower()
        multi_tc = ("v7" in kind) or ("7x" in kind)
    except Exception:
        pass

    if multi_tc:
        even = [t for t in tiles if (B // t) >= 2 and (B // t) % 2 == 0]
        if even:
            return max(even)
    return max(tiles)


def generator_forward(x, k, ratio, params, *, batch_tile=None):
    """x, k: [B, D] float32; ratio: python/0-d float; params: dict of weights."""
    B, D = x.shape
    w1x, w1g = params["w1x"], params["w1g"]
    b1, w2, b2 = params["b1"], params["w2"], params["b2"]
    w3, b3 = params["w3"], params["b3"]
    inner_dim = w1x.shape[1]
    out_dim = w3.shape[1]
    assert out_dim == D, "concat along batch requires out_dim == x feature dim"
    assert w1x.shape[0] == D and w1g.shape[0] == D

    tm = _pick_batch_tile(B) if batch_tile is None else batch_tile
    assert B % tm == 0, "batch must be divisible by the batch tile"
    grid = (B // tm,)

    # Prefetched scalars: [1 + ratio, ratio].
    scalars = jnp.asarray([1.0 + ratio, ratio], dtype=jnp.float32)

    grid_spec = pltpu.PrefetchScalarGridSpec(
        num_scalar_prefetch=1,
        grid=grid,
        in_specs=[
            pl.BlockSpec((tm, D), lambda i, s: (i, 0)),                 # x tile
            pl.BlockSpec((tm, D), lambda i, s: (i, 0)),                 # k tile
            pl.BlockSpec((D, inner_dim), lambda i, s: (0, 0)),          # w1x (resident)
            pl.BlockSpec((D, inner_dim), lambda i, s: (0, 0)),          # w1g (resident)
            pl.BlockSpec((1, inner_dim), lambda i, s: (0, 0)),          # b1
            pl.BlockSpec((inner_dim, inner_dim), lambda i, s: (0, 0)),  # w2
            pl.BlockSpec((1, inner_dim), lambda i, s: (0, 0)),          # b2
            pl.BlockSpec((inner_dim, out_dim), lambda i, s: (0, 0)),    # w3
            pl.BlockSpec((1, out_dim), lambda i, s: (0, 0)),            # b3
        ],
        out_specs=pl.BlockSpec((2, tm, out_dim), lambda i, s: (0, i, 0)),
    )

    out = pl.pallas_call(
        generator_kernel,
        out_shape=jax.ShapeDtypeStruct((2, B, out_dim), jnp.float32),
        grid_spec=grid_spec,
        compiler_params=pltpu.CompilerParams(
            dimension_semantics=("parallel",),       # batch tiles -> both TCs on v7x
            vmem_limit_bytes=48 * 1024 * 1024,       # safe under v7x's 64 MiB physical VMEM
        ),
    )(scalars, x, k, w1x, w1g, b1, w2, b2, w3, b3)

    # (2, B, out_dim) -> (2B, out_dim): rows [0, B) = x, rows [B, 2B) = generated.
    return out.reshape(2 * B, out_dim)


def init_params(key, in_dim, inner_dim, out_dim):
    """Deterministic synthetic weights, pre-transposed to [in, out].
    fc1 is split along its input (K) dimension into the x-half and gen-half.
    Weights are stored in bf16 (biases in f32)."""
    D = in_dim // 2
    ks = jax.random.split(key, 6)

    def lin(kw, kb, fan_in, fan_out):
        bound = 1.0 / jnp.sqrt(fan_in)
        w = jax.random.uniform(kw, (fan_in, fan_out), jnp.float32, -bound, bound)
        b = jax.random.uniform(kb, (1, fan_out), jnp.float32, -bound, bound)
        return w, b

    w1, b1 = lin(ks[0], ks[1], in_dim, inner_dim)
    w2, b2 = lin(ks[2], ks[3], inner_dim, inner_dim)
    w3, b3 = lin(ks[4], ks[5], inner_dim, out_dim)
    return {
        "w1x": w1[:D].astype(jnp.bfloat16),   # acts on x
        "w1g": w1[D:].astype(jnp.bfloat16),   # acts on generated
        "b1": b1,
        "w2": w2.astype(jnp.bfloat16), "b2": b2,
        "w3": w3.astype(jnp.bfloat16), "b3": b3,
    }


def reference_forward(x, k, ratio, p):
    """Pure-JAX reference mirroring the bf16-weight / f32-accumulate math."""
    gen = (1.0 + ratio) * x - ratio * k
    w1 = jnp.concatenate([p["w1x"], p["w1g"]], axis=0).astype(jnp.float32)
    x1 = jnp.concatenate([x, gen], axis=1).astype(jnp.bfloat16).astype(jnp.float32)
    h1 = jnp.maximum(jnp.dot(x1, w1, preferred_element_type=jnp.float32) + p["b1"], 0.0)
    h1 = h1.astype(jnp.bfloat16).astype(jnp.float32)
    h2 = jnp.maximum(
        jnp.dot(h1, p["w2"].astype(jnp.float32),
                preferred_element_type=jnp.float32) + p["b2"], 0.0)
    h2 = h2.astype(jnp.bfloat16).astype(jnp.float32)
    g = jnp.dot(h2, p["w3"].astype(jnp.float32),
                preferred_element_type=jnp.float32) + p["b3"]
    return jnp.concatenate([x, g], axis=0)


if __name__ == "__main__":
    # Shapes consistent with the module: in_dim = 2*D, out_dim = D (needed for
    # the batch concat), but scaled down from the 1024/1024/512 defaults.
    IN_DIM, INNER_DIM, OUT_DIM = 256, 256, 128
    B, D = 256, IN_DIM // 2
    ratio = 0.5

    key = jax.random.PRNGKey(0)
    kx, kk, kp = jax.random.split(key, 3)
    x = jax.random.normal(kx, (B, D), jnp.float32)
    k = jax.random.normal(kk, (B, D), jnp.float32)
    params = init_params(kp, IN_DIM, INNER_DIM, OUT_DIM)

    out = generator_forward(x, k, ratio, params)
    out = jax.block_until_ready(out)

    ref = reference_forward(x, k, ratio, params)
    assert out.shape == (2 * B, OUT_DIM)
    max_err = float(jnp.max(jnp.abs(out - ref)))
    assert jnp.allclose(out, ref, atol=2e-2, rtol=2e-2), f"max abs err {max_err}"

    print("KERNEL_OK")
</pallas_src>

<mosaic_0001>
module attributes {stable_mosaic.version = 11 : i64} {
  func.func @generator_kernel(%arg0: i32, %arg1: memref<2xf32, #tpu.memory_space<smem>>, %arg2: memref<256x128xf32, #tpu.memory_space<vmem>>, %arg3: memref<256x128xf32, #tpu.memory_space<vmem>>, %arg4: memref<128x256xbf16, #tpu.memory_space<vmem>>, %arg5: memref<128x256xbf16, #tpu.memory_space<vmem>>, %arg6: memref<1x256xf32, #tpu.memory_space<vmem>>, %arg7: memref<256x256xbf16, #tpu.memory_space<vmem>>, %arg8: memref<1x256xf32, #tpu.memory_space<vmem>>, %arg9: memref<256x128xbf16, #tpu.memory_space<vmem>>, %arg10: memref<1x128xf32, #tpu.memory_space<vmem>>, %arg11: memref<2x256x128xf32, #tpu.memory_space<vmem>>) attributes {dimension_semantics = [#tpu.dimension_semantics<parallel>], iteration_bounds = array<i64: 1>, scalar_prefetch = 1 : i64, scratch_operands = 0 : i64, tpu.core_type = #tpu.core_type<tc>, window_params = [{transform_indices = @transform_0, window_bounds = array<i64: 256, 128>}, {transform_indices = @transform_1, window_bounds = array<i64: 256, 128>}, {pipeline_mode = #tpu.pipeline_mode<synchronous>, transform_indices = @transform_2, window_bounds = array<i64: 128, 256>}, {pipeline_mode = #tpu.pipeline_mode<synchronous>, transform_indices = @transform_3, window_bounds = array<i64: 128, 256>}, {pipeline_mode = #tpu.pipeline_mode<synchronous>, transform_indices = @transform_4, window_bounds = array<i64: 1, 256>}, {pipeline_mode = #tpu.pipeline_mode<synchronous>, transform_indices = @transform_5, window_bounds = array<i64: 256, 256>}, {pipeline_mode = #tpu.pipeline_mode<synchronous>, transform_indices = @transform_6, window_bounds = array<i64: 1, 256>}, {pipeline_mode = #tpu.pipeline_mode<synchronous>, transform_indices = @transform_7, window_bounds = array<i64: 256, 128>}, {pipeline_mode = #tpu.pipeline_mode<synchronous>, transform_indices = @transform_8, window_bounds = array<i64: 1, 128>}, {transform_indices = @transform_9, window_bounds = array<i64: 2, 256, 128>}]} {
    %c0 = arith.constant 0 : index
    %0 = memref.load %arg1[%c0] : memref<2xf32, #tpu.memory_space<smem>>
    %c1 = arith.constant 1 : index
    %1 = memref.load %arg1[%c1] : memref<2xf32, #tpu.memory_space<smem>>
    %c0_0 = arith.constant 0 : index
    %c0_1 = arith.constant 0 : index
    %2 = vector.load %arg2[%c0_0, %c0_1] : memref<256x128xf32, #tpu.memory_space<vmem>>, vector<256x128xf32>
    %c0_2 = arith.constant 0 : index
    %c0_3 = arith.constant 0 : index
    %3 = vector.load %arg3[%c0_2, %c0_3] : memref<256x128xf32, #tpu.memory_space<vmem>>, vector<256x128xf32>
    %4 = vector.broadcast %0 : f32 to vector<256x128xf32>
    %5 = arith.mulf %4, %2 : vector<256x128xf32>
    %6 = vector.broadcast %1 : f32 to vector<256x128xf32>
    %7 = arith.mulf %6, %3 : vector<256x128xf32>
    %8 = arith.subf %5, %7 : vector<256x128xf32>
    %9 = arith.truncf %2 : vector<256x128xf32> to vector<256x128xbf16>
    %c0_4 = arith.constant 0 : index
    %c0_5 = arith.constant 0 : index
    %c0_6 = arith.constant 0 : index
    %10 = vector.load %arg11[%c0_4, %c0_5, %c0_6] : memref<2x256x128xf32, #tpu.memory_space<vmem>>, vector<1x256x128xf32>
    %11 = vector.shape_cast %10 : vector<1x256x128xf32> to vector<256x128xf32>
    %12 = vector.shape_cast %2 : vector<256x128xf32> to vector<1x256x128xf32>
    tpu.vector_store %arg11[%c0_4, %c0_5, %c0_6], %12 {strides = array<i32>} : memref<2x256x128xf32, #tpu.memory_space<vmem>>, vector<1x256x128xf32>,
    %13 = arith.truncf %8 : vector<256x128xf32> to vector<256x128xbf16>
    %c0_7 = arith.constant 0 : index
    %c0_8 = arith.constant 0 : index
    %14 = vector.load %arg4[%c0_7, %c0_8] : memref<128x256xbf16, #tpu.memory_space<vmem>>, vector<128x256xbf16>
    %cst = arith.constant dense<0.000000e+00> : vector<256x256xf32>
    %15 = tpu.matmul %9, %14, %cst {dimension_numbers = #tpu.dot_dimension_numbers<[1], [0], [0], [1], [0, 0, 1, 1], [], []>} : vector<256x128xbf16>, vector<128x256xbf16>, vector<256x256xf32> -> vector<256x256xf32>
    %c0_9 = arith.constant 0 : index
    %c0_10 = arith.constant 0 : index
    %16 = vector.load %arg5[%c0_9, %c0_10] : memref<128x256xbf16, #tpu.memory_space<vmem>>, vector<128x256xbf16>
    %cst_11 = arith.constant dense<0.000000e+00> : vector<256x256xf32>
    %17 = tpu.matmul %13, %16, %cst_11 {dimension_numbers = #tpu.dot_dimension_numbers<[1], [0], [0], [1], [0, 0, 1, 1], [], []>} : vector<256x128xbf16>, vector<128x256xbf16>, vector<256x256xf32> -> vector<256x256xf32>
    %18 = arith.addf %15, %17 : vector<256x256xf32>
    %c0_12 = arith.constant 0 : index
    %c0_13 = arith.constant 0 : index
    %19 = vector.load %arg6[%c0_12, %c0_13] : memref<1x256xf32, #tpu.memory_space<vmem>>, vector<1x256xf32>
    %20 = vector.broadcast %19 : vector<1x256xf32> to vector<256x256xf32>
    %21 = arith.addf %18, %20 : vector<256x256xf32>
    %cst_14 = arith.constant 0.000000e+00 : f32
    %22 = vector.broadcast %cst_14 : f32 to vector<256x256xf32>
    %23 = arith.maximumf %21, %22 : vector<256x256xf32>
    %24 = arith.truncf %23 : vector<256x256xf32> to vector<256x256xbf16>
    %c0_15 = arith.constant 0 : index
    %c0_16 = arith.constant 0 : index
    %25 = vector.load %arg7[%c0_15, %c0_16] : memref<256x256xbf16, #tpu.memory_space<vmem>>, vector<256x256xbf16>
    %cst_17 = arith.constant dense<0.000000e+00> : vector<256x256xf32>
    %26 = tpu.matmul %24, %25, %cst_17 {dimension_numbers = #tpu.dot_dimension_numbers<[1], [0], [0], [1], [0, 0, 1, 1], [], []>} : vector<256x256xbf16>, vector<256x256xbf16>, vector<256x256xf32> -> vector<256x256xf32>
    %c0_18 = arith.constant 0 : index
    %c0_19 = arith.constant 0 : index
    %27 = vector.load %arg8[%c0_18, %c0_19] : memref<1x256xf32, #tpu.memory_space<vmem>>, vector<1x256xf32>
    %28 = vector.broadcast %27 : vector<1x256xf32> to vector<256x256xf32>
    %29 = arith.addf %26, %28 : vector<256x256xf32>
    %cst_20 = arith.constant 0.000000e+00 : f32
    %30 = vector.broadcast %cst_20 : f32 to vector<256x256xf32>
    %31 = arith.maximumf %29, %30 : vector<256x256xf32>
    %32 = arith.truncf %31 : vector<256x256xf32> to vector<256x256xbf16>
    %c0_21 = arith.constant 0 : index
    %c0_22 = arith.constant 0 : index
    %33 = vector.load %arg9[%c0_21, %c0_22] : memref<256x128xbf16, #tpu.memory_space<vmem>>, vector<256x128xbf16>
    %cst_23 = arith.constant dense<0.000000e+00> : vector<256x128xf32>
    %34 = tpu.matmul %32, %33, %cst_23 {dimension_numbers = #tpu.dot_dimension_numbers<[1], [0], [0], [1], [0, 0, 1, 1], [], []>} : vector<256x256xbf16>, vector<256x128xbf16>, vector<256x128xf32> -> vector<256x128xf32>
    %c0_24 = arith.constant 0 : index
    %c0_25 = arith.constant 0 : index
    %35 = vector.load %arg10[%c0_24, %c0_25] : memref<1x128xf32, #tpu.memory_space<vmem>>, vector<1x128xf32>
    %36 = vector.broadcast %35 : vector<1x128xf32> to vector<256x128xf32>
    %37 = arith.addf %34, %36 : vector<256x128xf32>
    %c1_26 = arith.constant 1 : index
    %c0_27 = arith.constant 0 : index
    %c0_28 = arith.constant 0 : index
    %38 = vector.load %arg11[%c1_26, %c0_27, %c0_28] : memref<2x256x128xf32, #tpu.memory_space<vmem>>, vector<1x256x128xf32>
    %39 = vector.shape_cast %38 : vector<1x256x128xf32> to vector<256x128xf32>
    %40 = vector.shape_cast %37 : vector<256x128xf32> to vector<1x256x128xf32>
    tpu.vector_store %arg11[%c1_26, %c0_27, %c0_28], %40 {strides = array<i32>} : memref<2x256x128xf32, #tpu.memory_space<vmem>>, vector<1x256x128xf32>,
    return
  }
  func.func @transform_0(%arg0: i32, %arg1: memref<2xf32, #tpu.memory_space<smem>>) -> (i32, i32) {
    %c0_i32 = arith.constant 0 : i32
    %c0_i32_0 = arith.constant 0 : i32
    return %arg0, %c0_i32 : i32, i32
  }
  func.func @transform_1(%arg0: i32, %arg1: memref<2xf32, #tpu.memory_space<smem>>) -> (i32, i32) {
    %c0_i32 = arith.constant 0 : i32
    %c0_i32_0 = arith.constant 0 : i32
    return %arg0, %c0_i32 : i32, i32
  }
  func.func @transform_2(%arg0: i32, %arg1: memref<2xf32, #tpu.memory_space<smem>>) -> (i32, i32) {
    %c0_i32 = arith.constant 0 : i32
    %c0_i32_0 = arith.constant 0 : i32
    %c0_i32_1 = arith.constant 0 : i32
    return %c0_i32, %c0_i32_0 : i32, i32
  }
  func.func @transform_3(%arg0: i32, %arg1: memref<2xf32, #tpu.memory_space<smem>>) -> (i32, i32) {
    %c0_i32 = arith.constant 0 : i32
    %c0_i32_0 = arith.constant 0 : i32
    %c0_i32_1 = arith.constant 0 : i32
    return %c0_i32, %c0_i32_0 : i32, i32
  }
  func.func @transform_4(%arg0: i32, %arg1: memref<2xf32, #tpu.memory_space<smem>>) -> (i32, i32) {
    %c0_i32 = arith.constant 0 : i32
    %c0_i32_0 = arith.constant 0 : i32
    %c0_i32_1 = arith.constant 0 : i32
    return %c0_i32, %c0_i32_0 : i32, i32
  }
  func.func @transform_5(%arg0: i32, %arg1: memref<2xf32, #tpu.memory_space<smem>>) -> (i32, i32) {
    %c0_i32 = arith.constant 0 : i32
    %c0_i32_0 = arith.constant 0 : i32
    %c0_i32_1 = arith.constant 0 : i32
    return %c0_i32, %c0_i32_0 : i32, i32
  }
  func.func @transform_6(%arg0: i32, %arg1: memref<2xf32, #tpu.memory_space<smem>>) -> (i32, i32) {
    %c0_i32 = arith.constant 0 : i32
    %c0_i32_0 = arith.constant 0 : i32
    %c0_i32_1 = arith.constant 0 : i32
    return %c0_i32, %c0_i32_0 : i32, i32
  }
  func.func @transform_7(%arg0: i32, %arg1: memref<2xf32, #tpu.memory_space<smem>>) -> (i32, i32) {
    %c0_i32 = arith.constant 0 : i32
    %c0_i32_0 = arith.constant 0 : i32
    %c0_i32_1 = arith.constant 0 : i32
    return %c0_i32, %c0_i32_0 : i32, i32
  }
  func.func @transform_8(%arg0: i32, %arg1: memref<2xf32, #tpu.memory_space<smem>>) -> (i32, i32) {
    %c0_i32 = arith.constant 0 : i32
    %c0_i32_0 = arith.constant 0 : i32
    %c0_i32_1 = arith.constant 0 : i32
    return %c0_i32, %c0_i32_0 : i32, i32
  }
  func.func @transform_9(%arg0: i32, %arg1: memref<2xf32, #tpu.memory_space<smem>>) -> (i32, i32, i32) {
    %c0_i32 = arith.constant 0 : i32
    %c0_i32_0 = arith.constant 0 : i32
    %c0_i32_1 = arith.constant 0 : i32
    return %c0_i32, %arg0, %c0_i32_0 : i32, i32, i32
  }
}

</mosaic_0001>

<bundles_post_ra>
// kernel: tpu_custom_call.1
= control target key start
LH: loop header
LB: loop body
LE: loop exit
PB: predicated region body
PF: predicated region fallthrough
CT: control target
= control target key end

     0   :  { %s2730_s16 = smov [#allocation3]   ;;  %s3459_s0 = inlined_call_operand.hbm [shape: f32[2], index: 0, kind: input, shape index: {}]   ;;  %s3460_s1 = inlined_call_operand.hbm [shape: f32[256,128], index: 1, kind: input, shape index: {}]   ;;  %s3461_s2 = inlined_call_operand.hbm [shape: f32[256,128], index: 2, kind: input, shape index: {}]   ;;  %s3462_s3 = inlined_call_operand.hbm [shape: bf16[128,256], index: 3, kind: input, shape index: {}]   ;;  %s3463_s4 = inlined_call_operand.hbm [shape: bf16[128,256], index: 4, kind: input, shape index: {}]   ;;  %s3464_s5 = inlined_call_operand.vmem [shape: f32[1,256], index: 5, kind: input, shape index: {}]   ;;  %s3465_s6 = inlined_call_operand.hbm [shape: bf16[256,256], index: 6, kind: input, shape index: {}]   ;;  %s3466_s7 = inlined_call_operand.vmem [shape: f32[1,256], index: 7, kind: input, shape index: {}]   ;;  %s3467_s8 = inlined_call_operand.hbm [shape: bf16[256,128], index: 8, kind: input, shape index: {}]   ;;  %s3468_s9 = inlined_call_operand.vmem [shape: f32[1,128], index: 9, kind: input, shape index: {}]   ;;  %s3469_s10 = inlined_call_operand.hbm [shape: f32[2,256,128], index: 10, kind: output, shape index: {}]  }
   0x1   :  { %s16_s15 = sshll.u32 %s3459_s0, 4  ;;  %s17_s15 = int_to_ptr.hbm [resolvable:$true] %s16_s15 }
   0x2   :  { %19 = dma.hbm_to_smem %s17_s15, 16, %s2730_s16, [#allocation2] }
   0x3   :  { %2718 = dma.done.wait [#allocation2], 16 }
   0x4   :  { %2719 = vsyncadd [#allocation2], 4294967280 }
   0x5   :  { %22 = sfence }
   0x6   :  { %23 = vsyncpa [#allocation5], 0 }
   0x7   :  { %24 = vsyncpa [#allocation8], 0 }
   0x8   :  { %25 = vsyncpa [#allocation11], 0 }
   0x9   :  { %26 = vsyncpa [#allocation14], 0 }
   0xa   :  { %27 = vsyncpa [#allocation6], 0  ;;  %s45_s19 = sshll.u32 %s3461_s2, 4  ;;  %s2731_s20 = smov [#allocation7]   ;;  %s46_s19 = int_to_ptr.hbm [resolvable:$true] %s45_s19 }
   0xb   :  { %s47_s21 = sshll.u32 %s2731_s20, 4  ;;  %s71_s23 = sshll.u32 %s3463_s4, 4  ;;  %s48_s21 = int_to_ptr.vmem [resolvable:$true] %s47_s21  ;;  %s72_s23 = int_to_ptr.hbm [resolvable:$true] %s71_s23 }
   0xc   :  { %s2732_s24 = smov 128   ;;  %s2733_s25 = smov 8  }
   0xd   :  { %53 = dma.hbm_to_vmem [thread:$0]  %s46_s19, 4096, %s48_s21, [#allocation8], %s2732_s24, %s2732_s24, %s2733_s25  }
   0xe   :  { %s2734_s26 = smov [#allocation10]   ;;  %s32_s2 = sshll.u32 %s3460_s1, 4  ;;  %s33_s2 = int_to_ptr.hbm [resolvable:$true] %s32_s2 }
   0xf   :  { %s73_s27 = sshll.u32 %s2734_s26, 4  ;;  %s58_s11 = sshll.u32 %s3462_s3, 4  ;;  %s74_s27 = int_to_ptr.vmem [resolvable:$true] %s73_s27  ;;  %s59_s11 = int_to_ptr.hbm [resolvable:$true] %s58_s11 }
  0x10   :  { %79 = dma.hbm_to_vmem [thread:$0]  %s72_s23, 2048, %s74_s27, [#allocation11], %s2732_s24, %s2732_s24, %s2733_s25  }
  0x11   :  { %s2735_s12 = smov [#allocation4]   ;;  %s2736_s14 = smov [#allocation9]  }
  0x12   :  { %s34_s13 = sshll.u32 %s2735_s12, 4  ;;  %s60_s1 = sshll.u32 %s2736_s14, 4  ;;  %s35_s13 = int_to_ptr.vmem [resolvable:$true] %s34_s13  ;;  %s61_s1 = int_to_ptr.vmem [resolvable:$true] %s60_s1 }
  0x13   :  { %40 = dma.hbm_to_vmem [thread:$0]  %s33_s2, 4096, %s35_s13, [#allocation5], %s2732_s24, %s2732_s24, %s2733_s25  }
  0x14   :  { %s86_s17 = sshll.u32 %s3465_s6, 4  ;;  %s101_s19 = sshll.u32 %s3467_s8, 4  ;;  %s87_s17 = int_to_ptr.hbm [resolvable:$true] %s86_s17  ;;  %s102_s19 = int_to_ptr.hbm [resolvable:$true] %s101_s19 }
  0x15   :  { %66 = dma.hbm_to_vmem [thread:$0]  %s59_s11, 2048, %s61_s1, [#allocation8], %s2732_s24, %s2732_s24, %s2733_s25  }
  0x16   :  { %s2737_s20 = smov [#allocation12]   ;;  %s2738_s0 = smov [#allocation13]  }
  0x17   :  { %s88_s21 = sshll.u32 %s2737_s20, 4  ;;  %s103_s6 = sshll.u32 %s2738_s0, 4  ;;  %s89_s21 = int_to_ptr.vmem [resolvable:$true] %s88_s21  ;;  %s104_s6 = int_to_ptr.vmem [resolvable:$true] %s103_s6 }
  0x18   :  { %94 = dma.hbm_to_vmem [thread:$0]  %s87_s17, 4096, %s89_s21, [#allocation11], %s2732_s24, %s2732_s24, %s2733_s25  }
  0x19   :  { %s2739_s22 = smov 64   ;;  %s2740_s23 = smov 4  }
  0x1a   :  { %109 = dma.hbm_to_vmem [thread:$0]  %s102_s19, 2048, %s104_s6, [#allocation14], %s2739_s22, %s2739_s22, %s2740_s23  }
  0x1b   :  { %2720 = dma.done.wait [#allocation5], 4096  }
  0x1c   :  { %2721 = vsyncadd [#allocation5], 4294963200 }
  0x1d   :  { %2722 = dma.done.wait [#allocation8], 6144  }
  0x1e   :  { %2723 = vsyncadd [#allocation8], 4294961152 }
  0x1f   :  { %2724 = dma.done.wait [#allocation11], 6144  }
  0x20   :  { %2725 = vsyncadd [#allocation11], 4294961152 }
  0x21   :  { %2726 = dma.done.wait [#allocation14], 2048  }
  0x22   :  { %2727 = vsyncadd [#allocation14], 4294965248  ;;  %v2152_v0 = vld [vmem:[#allocation10 + $0x70] sm:$0xf]  ;;  %v2445_v1 = vld [vmem:[#allocation10 + $0x74] sm:$0xf0] }
  0x23   :  { %v2444_v2 = vld [vmem:[#allocation10 + $0x74] sm:$0xf]  ;;  %v2153_v3 = vor.u32 %v2445_v1, %v2152_v0  ;;  %v2154_v4 = vld [vmem:[#allocation10 + $0x78] sm:$0xf0]  ;;  %v2144_v5 = vld [vmem:[#allocation10 + $0x60] sm:$0xf] }
  0x24   :  { %v2443_v6 = vld [vmem:[#allocation10 + $0x64] sm:$0xf0]  ;;  %v2157_v7 = vor.u32 %v2444_v2, %v2154_v4  ;;  %v2442_v8 = vld [vmem:[#allocation10 + $0x64] sm:$0xf]  ;;  %v2146_v9 = vld [vmem:[#allocation10 + $0x68] sm:$0xf0] }
  0x25   :  { %2494 = vmatpush.bf16.msra.mxu2 %v2153_v3  ;;  %v2145_v10 = vor.u32 %v2443_v6, %v2144_v5  ;;  %476 = vmatpush.bf16.msra.mxu0 %v2153_v3  ;;  %v2149_v11 = vor.u32 %v2442_v8, %v2146_v9  ;;  %v2136_v12 = vld [vmem:[#allocation10 + $0x50] sm:$0xf]  ;;  %v2441_v13 = vld [vmem:[#allocation10 + $0x54] sm:$0xf0]  ;;  %v2440_v14 = vld [vmem:[#allocation10 + $0x54] sm:$0xf] }
  0x26   :  { %2502 = vmatpush.bf16.msra.mxu3 %v2157_v7  ;;  %565 = vmatpush.bf16.msra.mxu1 %v2157_v7  ;;  %v2138_v15 = vld [vmem:[#allocation10 + $0x58] sm:$0xf0]  ;;  %v2137_v16 = vor.u32 %v2441_v13, %v2136_v12  ;;  %v2128_v18 = vld [vmem:[#allocation10 + $0x40] sm:$0xf]  ;;  %v2439_v19 = vld [vmem:[#allocation10 + $0x44] sm:$0xf0] }
  0x27   :  { %v2141_v17 = vor.u32 %v2440_v14, %v2138_v15  ;;  %v2438_v20 = vld [vmem:[#allocation10 + $0x44] sm:$0xf]  ;;  %v2130_v21 = vld [vmem:[#allocation10 + $0x48] sm:$0xf0]  ;;  %s2833_s8 = sld [smem:[#allocation3]]  ;;  %v2129_v23 = vor.u32 %v2439_v19, %v2128_v18  ;;  %v2837_v28 = vld [vmem:[#allocation4 + $0x90] sm:$0xff] }
  0x28   :  { %v154_v22 = vld [vmem:[#allocation4 + $0x80] sm:$0xff]  ;;  %s2835_s26 = sld [smem:[#allocation3 + $0x1]]  ;;  %v155_v24 = vld [vmem:[#allocation4 + $0x88] sm:$0xff]  ;;  %v2133_v25 = vor.u32 %v2438_v20, %v2130_v21  ;;  %v2120_v26 = vld [vmem:[#allocation10 + $0x30] sm:$0xf]  ;;  %334 = vst [vmem:[#allocation15 + $0x90] sm:$0xff] %v2837_v28 }
  0x29   :  { %2495 = vmatpush.bf16.msra.mxu2 %v2145_v10  ;;  %477 = vmatpush.bf16.msra.mxu0 %v2145_v10  ;;  %332 = vst [vmem:[#allocation15 + $0x80] sm:$0xff] %v154_v22  ;;  %v2437_v27 = vld [vmem:[#allocation10 + $0x34] sm:$0xf0]  ;;  %v2436_v29 = vld [vmem:[#allocation10 + $0x34] sm:$0xf]  ;;  %v186_v39 = vld [vmem:[#allocation7 + $0x80] sm:$0xff] }
  0x2a   :  { %2503 = vmatpush.bf16.msra.mxu3 %v2149_v11  ;;  %566 = vmatpush.bf16.msra.mxu1 %v2149_v11  ;;  %333 = vst [vmem:[#allocation15 + $0x88] sm:$0xff] %v155_v24  ;;  %v2122_v30 = vld [vmem:[#allocation10 + $0x38] sm:$0xf0]  ;;  %v2121_v32 = vor.u32 %v2437_v27, %v2120_v26  ;;  %v2112_v34 = vld [vmem:[#allocation10 + $0x20] sm:$0xf]  ;;  %v187_v40 = vld [vmem:[#allocation7 + $0x88] sm:$0xff] }
  0x2b   :  { %v2839_v31 = vld [vmem:[#allocation4 + $0x98] sm:$0xff]  ;;  %v2125_v33 = vor.u32 %v2436_v29, %v2122_v30  ;;  %v2435_v35 = vld [vmem:[#allocation10 + $0x24] sm:$0xf0]  ;;  %v2434_v36 = vld [vmem:[#allocation10 + $0x24] sm:$0xf]  ;;  %s2077_s12 = sshll.u32 %s3469_s10, 4  ;;  %s2078_s12 = int_to_ptr.hbm [resolvable:$true] %s2077_s12 }
  0x2c   :  { %335 = vst [vmem:[#allocation15 + $0x98] sm:$0xff] %v2839_v31  ;;  %v2114_v37 = vld [vmem:[#allocation10 + $0x28] sm:$0xf0]  ;;  %v2113_v38 = vor.u32 %v2435_v35, %v2112_v34  ;;  %v2104_v44 = vld [vmem:[#allocation10 + $0x10] sm:$0xf]  ;;  %v2849_v46 = vld [vmem:[#allocation4 + $0xa0] sm:$0xff] }
  0x2d   :  { %2496 = vmatpush.bf16.msra.mxu2 %v2137_v16  ;;  %478 = vmatpush.bf16.msra.mxu0 %v2137_v16  ;;  %v2844_v41 = vstv %s2833_s8  ;;  %v2117_v43 = vor.u32 %v2434_v36, %v2114_v37  ;;  %v2433_v45 = vld [vmem:[#allocation10 + $0x14] sm:$0xf0]  ;;  %v2432_v47 = vld [vmem:[#allocation10 + $0x14] sm:$0xf]  ;;  %v2106_v48 = vld [vmem:[#allocation10 + $0x18] sm:$0xf0] }
  0x2e   :  { %2504 = vmatpush.bf16.msra.mxu3 %v2141_v17  ;;  %567 = vmatpush.bf16.msra.mxu1 %v2141_v17  ;;  %v2847_v42 = vstv %s2835_s26  ;;  %v2851_v49 = vld [vmem:[#allocation4 + $0xa8] sm:$0xff]  ;;  %336 = vst [vmem:[#allocation15 + $0xa0] sm:$0xff] %v2849_v46  ;;  %v219_v50 = vmul.f32 %v2844_v41, %v154_v22  ;;  %v220_v51 = vmul.f32 %v2844_v41, %v155_v24  ;;  %v2096_v56 = vld [vmem:[#allocation10] sm:$0xf]  ;;  %v2430_v58 = vld [vmem:[#allocation10 + $0x4] sm:$0xf] }
  0x2f   :  { %v252_v52 = vmul.f32 %v2847_v42, %v186_v39  ;;  %v253_v53 = vmul.f32 %v2847_v42, %v187_v40  ;;  %337 = vst [vmem:[#allocation15 + $0xa8] sm:$0xff] %v2851_v49  ;;  %v2105_v54 = vor.u32 %v2433_v45, %v2104_v44  ;;  %v2109_v55 = vor.u32 %v2432_v47, %v2106_v48  ;;  %v2431_v57 = vld [vmem:[#allocation10 + $0x4] sm:$0xf0]  ;;  %v2098_v59 = vld [vmem:[#allocation10 + $0x8] sm:$0xf0]  ;;  %v188_v13 = vld [vmem:[#allocation7 + $0x90] sm:$0xff] }
  0x30   :  { %v2216_v60 = vld [vmem:[#allocation9 + $0x70] sm:$0xf]  ;;  %v2429_v61 = vld [vmem:[#allocation9 + $0x74] sm:$0xf0]  ;;  %v2428_v0 = vld [vmem:[#allocation9 + $0x74] sm:$0xf]  ;;  %v2097_v2 = vor.u32 %v2431_v57, %v2096_v56  ;;  %v2101_v3 = vor.u32 %v2430_v58, %v2098_v59  ;;  %v222_v24 = vmul.f32 %v2844_v41, %v2839_v31 }
  0x31   :  { %2497 = vmatpush.bf16.msra.mxu2 %v2129_v23  ;;  %479 = vmatpush.bf16.msra.mxu0 %v2129_v23  ;;  %v284_v62 = vsub.f32 %v219_v50, %v252_v52  ;;  %v285_v63 = vsub.f32 %v220_v51, %v253_v53  ;;  %v2218_v1 = vld [vmem:[#allocation9 + $0x78] sm:$0xf0]  ;;  %v2217_v4 = vor.u32 %v2429_v61, %v2216_v60  ;;  %v2208_v6 = vld [vmem:[#allocation9 + $0x60] sm:$0xf]  ;;  %v2427_v7 = vld [vmem:[#allocation9 + $0x64] sm:$0xf0] }
  0x32   :  { %2505 = vmatpush.bf16.msra.mxu3 %v2133_v25  ;;  %568 = vmatpush.bf16.msra.mxu1 %v2133_v25  ;;  %v2221_v5 = vor.u32 %v2428_v0, %v2218_v1  ;;  %v2426_v9 = vld [vmem:[#allocation9 + $0x64] sm:$0xf]  ;;  %v2210_v10 = vld [vmem:[#allocation9 + $0x68] sm:$0xf0]  ;;  %v2209_v11 = vor.u32 %v2427_v7, %v2208_v6  ;;  %v189_v14 = vld [vmem:[#allocation7 + $0x98] sm:$0xff]  ;;  %v221_v23 = vmul.f32 %v2844_v41, %v2837_v28 }
  0x33   :  { %v356_v8 = vpack.c.bf16 %v285_v63, %v284_v62  ;;  %v2213_v12 = vor.u32 %v2426_v9, %v2210_v10  ;;  %v2200_v15 = vld [vmem:[#allocation9 + $0x50] sm:$0xf]  ;;  %v2425_v16 = vld [vmem:[#allocation9 + $0x54] sm:$0xf0]  ;;  %v2424_v17 = vld [vmem:[#allocation9 + $0x54] sm:$0xf]  ;;  %v254_v25 = vmul.f32 %v2847_v42, %v188_v13  ;;  %v255_v26 = vmul.f32 %v2847_v42, %v189_v14 }
  0x34   :  { %v2201_v18 = vor.u32 %v2425_v16, %v2200_v15  ;;  %v2202_v19 = vld [vmem:[#allocation9 + $0x58] sm:$0xf0]  ;;  %v160_v20 = vld [vmem:[#allocation4 + $0xb0] sm:$0xff]  ;;  %v2192_v34 = vld [vmem:[#allocation9 + $0x40] sm:$0xf] }
  0x35   :  { %2498 = vmatpush.bf16.msra.mxu2 %v2121_v32  ;;  %480 = vmatpush.bf16.msra.mxu0 %v2121_v32  ;;  %v2205_v21 = vor.u32 %v2424_v17, %v2202_v19  ;;  %v2859_v22 = vld [vmem:[#allocation4 + $0xb8] sm:$0xff]  ;;  %338 = vst [vmem:[#allocation15 + $0xb0] sm:$0xff] %v160_v20  ;;  %v286_v27 = vsub.f32 %v221_v23, %v254_v25  ;;  %v190_v32 = vld [vmem:[#allocation7 + $0xa0] sm:$0xff]  ;;  %v2423_v28 = vld [vmem:[#allocation9 + $0x44] sm:$0xf0] }
  0x36   :  { %2506 = vmatpush.bf16.msra.mxu3 %v2125_v33  ;;  %569 = vmatpush.bf16.msra.mxu1 %v2125_v33  ;;  %339 = vst [vmem:[#allocation15 + $0xb8] sm:$0xff] %v2859_v22  ;;  %v287_v29 = vsub.f32 %v222_v24, %v255_v26  ;;  %v191_v33 = vld [vmem:[#allocation7 + $0xa8] sm:$0xff]  ;;  %v2422_v35 = vld [vmem:[#allocation9 + $0x44] sm:$0xf]  ;;  %v2193_v36 = vor.u32 %v2423_v28, %v2192_v34  ;;  %v192_v51 = vld [vmem:[#allocation7 + $0xb0] sm:$0xff] }
  0x37   :  { %v2194_v31 = vld [vmem:[#allocation9 + $0x48] sm:$0xf0]  ;;  %v162_v37 = vld [vmem:[#allocation4 + $0xc0] sm:$0xff]  ;;  %v256_v44 = vmul.f32 %v2847_v42, %v190_v32  ;;  %v257_v45 = vmul.f32 %v2847_v42, %v191_v33  ;;  %v193_v52 = vld [vmem:[#allocation7 + $0xb8] sm:$0xff]  ;;  %v225_v57 = vmul.f32 %v2844_v41, %v160_v20  ;;  %v226_v60 = vmul.f32 %v2844_v41, %v2859_v22 }
  0x38   :  { %v357_v30 = vpack.c.bf16 %v287_v29, %v286_v27  ;;  %v2197_v39 = vor.u32 %v2422_v35, %v2194_v31  ;;  %v163_v40 = vld [vmem:[#allocation4 + $0xc8] sm:$0xff]  ;;  %340 = vst [vmem:[#allocation15 + $0xc0] sm:$0xff] %v162_v37  ;;  %v2421_v53 = vld [vmem:[#allocation9 + $0x34] sm:$0xf0]  ;;  %v2186_v56 = vld [vmem:[#allocation9 + $0x38] sm:$0xf0]  ;;  %v258_v61 = vmul.f32 %v2847_v42, %v192_v51  ;;  %v259_v62 = vmul.f32 %v2847_v42, %v193_v52 }
  0x39   :  { %2499 = vmatpush.bf16.msra.mxu2 %v2113_v38  ;;  %481 = vmatpush.bf16.msra.mxu0 %v2113_v38  ;;  %v223_v38 = vmul.f32 %v2844_v41, %v2849_v46  ;;  %341 = vst [vmem:[#allocation15 + $0xc8] sm:$0xff] %v163_v40  ;;  %v2184_v46 = vld [vmem:[#allocation9 + $0x30] sm:$0xf]  ;;  %v165_v59 = vld [vmem:[#allocation4 + $0xd8] sm:$0xff]  ;;  %v2418_v6 = vld [vmem:[#allocation9 + $0x24] sm:$0xf]  ;;  %v227_v10 = vmul.f32 %v2844_v41, %v162_v37 }
  0x3a   :  { %2507 = vmatpush.bf16.msra.mxu3 %v2117_v43  ;;  %570 = vmatpush.bf16.msra.mxu1 %v2117_v43  ;;  %v224_v43 = vmul.f32 %v2844_v41, %v2851_v49  ;;  %v164_v49 = vld [vmem:[#allocation4 + $0xd0] sm:$0xff]  ;;  %343 = vst [vmem:[#allocation15 + $0xd8] sm:$0xff] %v165_v59  ;;  %v290_v63 = vsub.f32 %v225_v57, %v258_v61  ;;  %v166_v9 = vld [vmem:[#allocation4 + $0xe0] sm:$0xff]  ;;  %v197_v20 = vld [vmem:[#allocation7 + $0xd8] sm:$0xff] }
  0x3b   :  { %v288_v47 = vsub.f32 %v223_v38, %v256_v44  ;;  %342 = vst [vmem:[#allocation15 + $0xd0] sm:$0xff] %v164_v49  ;;  %v291_v0 = vsub.f32 %v226_v60, %v259_v62  ;;  %v228_v13 = vmul.f32 %v2844_v41, %v163_v40  ;;  %v196_v19 = vld [vmem:[#allocation7 + $0xd0] sm:$0xff]  ;;  %v2417_v23 = vld [vmem:[#allocation9 + $0x14] sm:$0xf0]  ;;  %v2170_v26 = vld [vmem:[#allocation9 + $0x18] sm:$0xf0]  ;;  %v229_v29 = vmul.f32 %v2844_v41, %v164_v49 }
  0x3c   :  { %v289_v48 = vsub.f32 %v224_v43, %v257_v45  ;;  %344 = vst [vmem:[#allocation15 + $0xe0] sm:$0xff] %v166_v9  ;;  %v2416_v24 = vld [vmem:[#allocation9 + $0x14] sm:$0xf]  ;;  %v169_v32 = vld [vmem:[#allocation4 + $0xf8] sm:$0xff]  ;;  %v230_v33 = vmul.f32 %v2844_v41, %v165_v59  ;;  %v262_v34 = vmul.f32 %v2847_v42, %v196_v19  ;;  %v263_v28 = vmul.f32 %v2847_v42, %v197_v20  ;;  %v198_v37 = vld [vmem:[#allocation7 + $0xe0] sm:$0xff] }
  0x3d   :  { %2500 = vmatpush.bf16.msra.mxu2 %v2105_v54  ;;  %482 = vmatpush.bf16.msra.mxu0 %v2105_v54  ;;  %v2420_v54 = vld [vmem:[#allocation9 + $0x34] sm:$0xf]  ;;  %v359_v1 = vpack.c.bf16 %v291_v0, %v290_v63  ;;  %347 = vst [vmem:[#allocation15 + $0xf8] sm:$0xff] %v169_v32  ;;  %v199_v38 = vld [vmem:[#allocation7 + $0xe8] sm:$0xff]  ;;  %v2414_v43 = vld [vmem:[#allocation9 + $0x4] sm:$0xf]  ;;  %v231_v44 = vmul.f32 %v2844_v41, %v166_v9 }
  0x3e   :  { %2508 = vmatpush.bf16.msra.mxu3 %v2109_v55  ;;  %571 = vmatpush.bf16.msra.mxu1 %v2109_v55  ;;  %v358_v50 = vpack.c.bf16 %v289_v48, %v288_v47  ;;  %v2185_v55 = vor.u32 %v2421_v53, %v2184_v46  ;;  %v2189_v58 = vor.u32 %v2420_v54, %v2186_v56  ;;  %v168_v27 = vld [vmem:[#allocation4 + $0xf0] sm:$0xff]  ;;  %v2415_v40 = vld [vmem:[#allocation9 + $0x4] sm:$0xf0]  ;;  %v2162_v48 = vld [vmem:[#allocation9 + $0x8] sm:$0xf0] }
  0x3f   :  { %346 = vst [vmem:[#allocation15 + $0xf0] sm:$0xff] %v168_v27  ;;  %v294_v35 = vsub.f32 %v229_v29, %v262_v34  ;;  %v2891_v51 = vld [vmem:[#allocation4 + $0x8] sm:$0xff]  ;;  %v264_v52 = vmul.f32 %v2847_v42, %v198_v37  ;;  %v2165_v46 = vor.u32 %v2414_v43, %v2162_v48  ;;  %v170_v53 = vld [vmem:[#allocation7] sm:$0xff]  ;;  %v265_v49 = vmul.f32 %v2847_v42, %v199_v38  ;;  %v2280_v29 = vld [vmem:[#allocation12 + $0x70] sm:$0xf] }
  0x40   :  { %v171_v54 = vld [vmem:[#allocation7 + $0x8] sm:$0xff]  ;;  %v204_v56 = vmul.f32 %v2844_v41, %v2891_v51  ;;  %v236_v57 = vmul.f32 %v2847_v42, %v170_v53  ;;  %317 = vst [vmem:[#allocation15 + $0x8] sm:$0xff] %v2891_v51  ;;  %v2477_v34 = vld [vmem:[#allocation12 + $0xf4] sm:$0xf0] }
  0x41   :  { %2501 = vmatpush.bf16.msra.mxu2 %v2097_v2  ;;  %483 = vmatpush.bf16.msra.mxu0 %v2097_v2  ;;  %v194_v2 = vld [vmem:[#allocation7 + $0xc0] sm:$0xff]  ;;  %v296_v61 = vsub.f32 %v231_v44, %v264_v52  ;;  %v175_v37 = vld [vmem:[#allocation7 + $0x28] sm:$0xff] }
  0x42   :  { %2509 = vmatpush.bf16.msra.mxu3 %v2101_v3  ;;  %572 = vmatpush.bf16.msra.mxu1 %v2101_v3  ;;  %v195_v3 = vld [vmem:[#allocation7 + $0xc8] sm:$0xff]  ;;  %v260_v14 = vmul.f32 %v2847_v42, %v194_v2  ;;  %v201_v2 = vld [vmem:[#allocation7 + $0xf8] sm:$0xff]  ;;  %v241_v43 = vmul.f32 %v2847_v42, %v175_v37  ;;  %v2458_v52 = vld [vmem:[#allocation12 + $0x64] sm:$0xf] }
  0x43   :  { %v261_v15 = vmul.f32 %v2847_v42, %v195_v3  ;;  %v2460_v3 = vld [vmem:[#allocation12 + $0x74] sm:$0xf]  ;;  %v267_v9 = vmul.f32 %v2847_v42, %v201_v2 }
  0x44   :  { %524 = vmatmul.bf16.vlgmr.msra.gmra.mxu2 %v356_v8  ;;  %v292_v16 = vsub.f32 %v227_v10, %v260_v14  ;;  %v2476_v10 = vld [vmem:[#allocation12 + $0xf4] sm:$0xf] }
  0x45   :  { %734 = vmatpush.bf16.msrb.mxu2 %v2217_v4  ;;  %613 = vmatmul.bf16.vlgmr.msra.gmra.mxu3 %v356_v8  ;;  %v2176_v4 = vld [vmem:[#allocation9 + $0x20] sm:$0xf]  ;;  %v2178_v8 = vld [vmem:[#allocation9 + $0x28] sm:$0xf0]  ;;  %v293_v17 = vsub.f32 %v228_v13, %v261_v15  ;;  %v2907_v15 = vld [vmem:[#allocation4 + $0x10] sm:$0xff] }
  0x46   :  { %823 = vmatpush.bf16.msrb.mxu3 %v2221_v5  ;;  %v2419_v5 = vld [vmem:[#allocation9 + $0x24] sm:$0xf0]  ;;  %v205_v19 = vmul.f32 %v2844_v41, %v2907_v15  ;;  %318 = vst [vmem:[#allocation15 + $0x10] sm:$0xff] %v2907_v15  ;;  %v2456_v37 = vld [vmem:[#allocation12 + $0x54] sm:$0xf] }
  0x47   :  { %v2177_v7 = vor.u32 %v2419_v5, %v2176_v4  ;;  %v2282_v4 = vld [vmem:[#allocation12 + $0x78] sm:$0xf0] }
  0x48   :  { %v2285_v5 = vor.u32 %v2460_v3, %v2282_v4 }
  0x49   :  { %735 = vmatpush.bf16.msrb.mxu2 %v2209_v11  ;;  %v2181_v11 = vor.u32 %v2418_v6, %v2178_v8  ;;  %v233_v6 = vmul.f32 %v2844_v41, %v168_v27 }
  0x4a   :  { %824 = vmatpush.bf16.msrb.mxu3 %v2213_v12  ;;  %v167_v12 = vld [vmem:[#allocation4 + $0xe8] sm:$0xff] }
  0x4b   :  { %345 = vst [vmem:[#allocation15 + $0xe8] sm:$0xff] %v167_v12  ;;  %v232_v45 = vmul.f32 %v2844_v41, %v167_v12 }
  0x4d   :  { %736 = vmatpush.bf16.msrb.mxu2 %v2201_v18  ;;  %v360_v18 = vpack.c.bf16 %v293_v17, %v292_v16  ;;  %v297_v62 = vsub.f32 %v232_v45, %v265_v49  ;;  %v2909_v16 = vld [vmem:[#allocation4 + $0x18] sm:$0xff]  ;;  %v172_v17 = vld [vmem:[#allocation7 + $0x10] sm:$0xff]  ;;  %v2459_v49 = vld [vmem:[#allocation12 + $0x64] sm:$0xf0] }
  0x4e   :  { %825 = vmatpush.bf16.msrb.mxu3 %v2205_v21  ;;  %v2168_v21 = vld [vmem:[#allocation9 + $0x10] sm:$0xf]  ;;  %v206_v20 = vmul.f32 %v2844_v41, %v2909_v16  ;;  %319 = vst [vmem:[#allocation15 + $0x18] sm:$0xff] %v2909_v16 }
  0x4f   :  { %v2169_v25 = vor.u32 %v2417_v23, %v2168_v21  ;;  %v362_v0 = vpack.c.bf16 %v297_v62, %v296_v61  ;;  %v238_v21 = vmul.f32 %v2847_v42, %v172_v17  ;;  %v2937_v62 = vld [vmem:[#allocation4 + $0x30] sm:$0xff]  ;;  %v2457_v17 = vld [vmem:[#allocation12 + $0x54] sm:$0xf0] }
  0x50   :  { %v209_v2 = vmul.f32 %v2844_v41, %v2937_v62  ;;  %322 = vst [vmem:[#allocation15 + $0x30] sm:$0xff] %v2937_v62 }
  0x51   :  { %737 = vmatpush.bf16.msrb.mxu2 %v2193_v36  ;;  %v295_v36 = vsub.f32 %v230_v33, %v263_v28 }
  0x52   :  { %826 = vmatpush.bf16.msrb.mxu3 %v2197_v39  ;;  %v2160_v39 = vld [vmem:[#allocation9] sm:$0xf] }
  0x53   :  { %v361_v31 = vpack.c.bf16 %v295_v36, %v294_v35  ;;  %v2161_v47 = vor.u32 %v2415_v40, %v2160_v39  ;;  %v2919_v35 = vld [vmem:[#allocation4 + $0x20] sm:$0xff]  ;;  %v2921_v36 = vld [vmem:[#allocation4 + $0x28] sm:$0xff] }
  0x54   :  { %529 = vmatmul.bf16.gmra.mxu2 %v357_v30  ;;  %v207_v38 = vmul.f32 %v2844_v41, %v2919_v35  ;;  %v208_v39 = vmul.f32 %v2844_v41, %v2921_v36  ;;  %320 = vst [vmem:[#allocation15 + $0x20] sm:$0xff] %v2919_v35 }
  0x55   :  { %618 = vmatmul.bf16.gmra.mxu3 %v357_v30  ;;  %738 = vmatpush.bf16.msrb.mxu2 %v2185_v55  ;;  %v2173_v30 = vor.u32 %v2416_v24, %v2170_v26  ;;  %v270_v24 = vsub.f32 %v205_v19, %v238_v21  ;;  %321 = vst [vmem:[#allocation15 + $0x28] sm:$0xff] %v2921_v36 }
  0x56   :  { %827 = vmatpush.bf16.msrb.mxu3 %v2189_v58  ;;  %v237_v58 = vmul.f32 %v2847_v42, %v171_v54 }
  0x58   :  { %v269_v60 = vsub.f32 %v204_v56, %v237_v58  ;;  %v2272_v56 = vld [vmem:[#allocation12 + $0x60] sm:$0xf] }
  0x59   :  { %739 = vmatpush.bf16.msrb.mxu2 %v2177_v7  ;;  %v234_v7 = vmul.f32 %v2844_v41, %v169_v32  ;;  %v2344_v32 = vld [vmem:[#allocation12 + $0xf0] sm:$0xf]  ;;  %v2273_v58 = vor.u32 %v2459_v49, %v2272_v56  ;;  %v2983_v49 = vld [vmem:[#allocation4 + $0x58] sm:$0xff] }
  0x5a   :  { %828 = vmatpush.bf16.msrb.mxu3 %v2181_v11  ;;  %v2346_v11 = vld [vmem:[#allocation12 + $0xf8] sm:$0xf0]  ;;  %v2345_v28 = vor.u32 %v2477_v34, %v2344_v32  ;;  %v302_v34 = vpack.c.bf16 %v2921_v36, %v2919_v35  ;;  %v2320_v35 = vld [vmem:[#allocation12 + $0xc0] sm:$0xf]  ;;  %v2471_v36 = vld [vmem:[#allocation12 + $0xc4] sm:$0xf0] }
  0x5b   :  { %v2349_v12 = vor.u32 %v2476_v10, %v2346_v11  ;;  %v299_v14 = vsub.f32 %v234_v7, %v267_v9  ;;  %v301_v9 = vpack.c.bf16 %v2909_v16, %v2907_v15  ;;  %v2961_v15 = vld [vmem:[#allocation4 + $0x48] sm:$0xff]  ;;  %v178_v16 = vld [vmem:[#allocation7 + $0x40] sm:$0xff]  ;;  %v2981_v56 = vld [vmem:[#allocation4 + $0x50] sm:$0xff]  ;;  %327 = vst [vmem:[#allocation15 + $0x58] sm:$0xff] %v2983_v49 }
  0x5c   :  { %1365 = vmatpush.bf16.msrb.mxu1 %v2345_v28  ;;  %325 = vst [vmem:[#allocation15 + $0x48] sm:$0xff] %v2961_v15 }
  0x5d   :  { %740 = vmatpush.bf16.msrb.mxu2 %v2169_v25  ;;  %326 = vst [vmem:[#allocation15 + $0x50] sm:$0xff] %v2981_v56 }
  0x5e   :  { %829 = vmatpush.bf16.msrb.mxu3 %v2173_v30  ;;  %v2461_v30 = vld [vmem:[#allocation12 + $0x74] sm:$0xf0] }
  0x5f   :  { %v2281_v33 = vor.u32 %v2461_v30, %v2280_v29 }
  0x61   :  { %741 = vmatpush.bf16.msrb.mxu2 %v2161_v47  ;;  %1276 = vmatpush.bf16.msrb.mxu0 %v2281_v33  ;;  %v273_v47 = vsub.f32 %v208_v39, %v241_v43 }
  0x62   :  { %830 = vmatpush.bf16.msrb.mxu3 %v2165_v46  ;;  %v2274_v46 = vld [vmem:[#allocation12 + $0x68] sm:$0xf0] }
  0x63   :  { %v2277_v53 = vor.u32 %v2458_v52, %v2274_v46  ;;  %v2330_v52 = vld [vmem:[#allocation12 + $0xd8] sm:$0xf0] }
  0x64   :  { %534 = vmatmul.bf16.gmra.mxu2 %v358_v50 }
  0x65   :  { %623 = vmatmul.bf16.gmra.mxu3 %v358_v50  ;;  %v2889_v50 = vld [vmem:[#allocation4] sm:$0xff]  ;;  %1454 = vmatpush.bf16.msra.mxu2 %v2285_v5 }
  0x66   :  { %v203_v55 = vmul.f32 %v2844_v41, %v2889_v50  ;;  %316 = vst [vmem:[#allocation15] sm:$0xff] %v2889_v50  ;;  %1543 = vmatpush.bf16.msra.mxu3 %v2349_v12  ;;  %v300_v45 = vpack.c.bf16 %v2891_v51, %v2889_v50  ;;  %v2336_v50 = vld [vmem:[#allocation12 + $0xe0] sm:$0xf]  ;;  %v2475_v51 = vld [vmem:[#allocation12 + $0xe4] sm:$0xf0]  ;;  %1277 = vmatpush.bf16.msrb.mxu0 %v2273_v58  ;;  %v181_v58 = vld [vmem:[#allocation7 + $0x58] sm:$0xff] }
  0x67   :  { %v2337_v61 = vor.u32 %v2475_v51, %v2336_v50  ;;  %v214_v50 = vmul.f32 %v2844_v41, %v2983_v49 }
  0x68   :  { %v268_v59 = vsub.f32 %v203_v55, %v236_v57  ;;  %v2474_v57 = vld [vmem:[#allocation12 + $0xe4] sm:$0xf] }
  0x69   :  { %1455 = vmatpush.bf16.msra.mxu2 %v2277_v53  ;;  %1366 = vmatpush.bf16.msrb.mxu1 %v2337_v61  ;;  %v2321_v53 = vor.u32 %v2471_v36, %v2320_v35  ;;  %v2322_v35 = vld [vmem:[#allocation12 + $0xc8] sm:$0xf0] }
  0x6a   :  { %v348_v63 = vpack.c.bf16 %v269_v60, %v268_v59  ;;  %v2338_v59 = vld [vmem:[#allocation12 + $0xe8] sm:$0xf0] }
  0x6b   :  { %v2341_v60 = vor.u32 %v2474_v57, %v2338_v59  ;;  %v180_v57 = vld [vmem:[#allocation7 + $0x50] sm:$0xff]  ;;  %v213_v59 = vmul.f32 %v2844_v41, %v2981_v56 }
  0x6c   :  { %484 = vmatmul.bf16.vlgmr.msra.gmra.mxu0 %v348_v63  ;;  %573 = vmatmul.bf16.vlgmr.msra.gmra.mxu1 %v348_v63  ;;  %v2939_v63 = vld [vmem:[#allocation4 + $0x38] sm:$0xff]  ;;  %v246_v51 = vmul.f32 %v2847_v42, %v180_v57 }
  0x6d   :  { %1544 = vmatpush.bf16.msra.mxu3 %v2341_v60  ;;  %v210_v3 = vmul.f32 %v2844_v41, %v2939_v63  ;;  %323 = vst [vmem:[#allocation15 + $0x38] sm:$0xff] %v2939_v63  ;;  %v247_v60 = vmul.f32 %v2847_v42, %v181_v58  ;;  %v153_v57 = vld [vmem:[#allocation4 + $0x78] sm:$0xff]  ;;  %v184_v58 = vld [vmem:[#allocation7 + $0x70] sm:$0xff] }
  0x6e   :  { %331 = vst [vmem:[#allocation15 + $0x78] sm:$0xff] %v153_v57 }
  0x74   :  { %539 = vmatmul.bf16.gmra.mxu2 %v359_v1 }
  0x75   :  { %628 = vmatmul.bf16.gmra.mxu3 %v359_v1  ;;  %v200_v1 = vld [vmem:[#allocation7 + $0xf0] sm:$0xff] }
  0x76   :  { %v266_v8 = vmul.f32 %v2847_v42, %v200_v1  ;;  %v177_v1 = vld [vmem:[#allocation7 + $0x38] sm:$0xff] }
  0x77   :  { %v243_v5 = vmul.f32 %v2847_v42, %v177_v1 }
  0x78   :  { %v298_v13 = vsub.f32 %v233_v6, %v266_v8 }
  0x79   :  { %v275_v10 = vsub.f32 %v210_v3, %v243_v5  ;;  %v279_v3 = vsub.f32 %v214_v50, %v247_v60  ;;  %v250_v60 = vmul.f32 %v2847_v42, %v184_v58 }
  0x7a   :  { %v363_v25 = vpack.c.bf16 %v299_v14, %v298_v13  ;;  %v2264_v14 = vld [vmem:[#allocation12 + $0x50] sm:$0xf] }
  0x7b   :  { %v2265_v19 = vor.u32 %v2457_v17, %v2264_v14  ;;  %v2469_v17 = vld [vmem:[#allocation12 + $0xb4] sm:$0xf0] }
  0x7d   :  { %1278 = vmatpush.bf16.msrb.mxu0 %v2265_v19  ;;  %v3003_v19 = vld [vmem:[#allocation4 + $0x60] sm:$0xff] }
  0x7e   :  { %328 = vst [vmem:[#allocation15 + $0x60] sm:$0xff] %v3003_v19 }
  0x84   :  { %544 = vmatmul.bf16.gmra.mxu2 %v360_v18 }
  0x85   :  { %633 = vmatmul.bf16.gmra.mxu3 %v360_v18  ;;  %v173_v18 = vld [vmem:[#allocation7 + $0x18] sm:$0xff] }
  0x86   :  { %v239_v23 = vmul.f32 %v2847_v42, %v173_v18  ;;  %v2328_v18 = vld [vmem:[#allocation12 + $0xd0] sm:$0xf] }
  0x88   :  { %v271_v26 = vsub.f32 %v206_v20, %v239_v23  ;;  %v2473_v20 = vld [vmem:[#allocation12 + $0xd4] sm:$0xf0]  ;;  %v2959_v23 = vld [vmem:[#allocation4 + $0x40] sm:$0xff] }
  0x89   :  { %v2329_v21 = vor.u32 %v2473_v20, %v2328_v18  ;;  %324 = vst [vmem:[#allocation15 + $0x40] sm:$0xff] %v2959_v23  ;;  %v183_v20 = vld [vmem:[#allocation7 + $0x68] sm:$0xff] }
  0x8a   :  { %v349_v27 = vpack.c.bf16 %v271_v26, %v270_v24  ;;  %v179_v24 = vld [vmem:[#allocation7 + $0x48] sm:$0xff]  ;;  %v212_v26 = vmul.f32 %v2844_v41, %v2961_v15 }
  0x8b   :  { %1367 = vmatpush.bf16.msrb.mxu1 %v2329_v21  ;;  %v245_v29 = vmul.f32 %v2847_v42, %v179_v24  ;;  %v215_v21 = vmul.f32 %v2844_v41, %v3003_v19 }
  0x8c   :  { %489 = vmatmul.bf16.gmra.mxu0 %v349_v27  ;;  %578 = vmatmul.bf16.gmra.mxu1 %v349_v27  ;;  %v244_v27 = vmul.f32 %v2847_v42, %v178_v16 }
  0x8d   :  { %v277_v28 = vsub.f32 %v212_v26, %v245_v29 }
  0x8f   :  { %1368 = vmatpush.bf16.msrb.mxu1 %v2321_v53  ;;  %v152_v53 = vld [vmem:[#allocation4 + $0x70] sm:$0xff] }
  0x90   :  { %v217_v50 = vmul.f32 %v2844_v41, %v152_v53  ;;  %330 = vst [vmem:[#allocation15 + $0x70] sm:$0xff] %v152_v53 }
  0x94   :  { %549 = vmatmul.bf16.gmra.mxu2 %v361_v31 }
  0x95   :  { %638 = vmatmul.bf16.gmra.mxu3 %v361_v31  ;;  %v174_v31 = vld [vmem:[#allocation7 + $0x20] sm:$0xff] }
  0x96   :  { %v240_v40 = vmul.f32 %v2847_v42, %v174_v31 }
  0x98   :  { %v272_v44 = vsub.f32 %v207_v38, %v240_v40  ;;  %v2266_v38 = vld [vmem:[#allocation12 + $0x58] sm:$0xf0] }
  0x99   :  { %v2269_v39 = vor.u32 %v2456_v37, %v2266_v38  ;;  %v2258_v37 = vld [vmem:[#allocation12 + $0x48] sm:$0xf0] }
  0x9a   :  { %v350_v48 = vpack.c.bf16 %v273_v47, %v272_v44  ;;  %v2256_v44 = vld [vmem:[#allocation12 + $0x40] sm:$0xf]  ;;  %v2472_v47 = vld [vmem:[#allocation12 + $0xd4] sm:$0xf] }
  0x9b   :  { %1456 = vmatpush.bf16.msra.mxu2 %v2269_v39  ;;  %v2333_v46 = vor.u32 %v2472_v47, %v2330_v52  ;;  %v2451_v47 = vld [vmem:[#allocation12 + $0x24] sm:$0xf0] }
  0x9c   :  { %494 = vmatmul.bf16.gmra.mxu0 %v350_v48  ;;  %583 = vmatmul.bf16.gmra.mxu1 %v350_v48 }
  0x9d   :  { %1545 = vmatpush.bf16.msra.mxu3 %v2333_v46 }
  0xa4   :  { %554 = vmatmul.bf16.gmra.mxu2 %v362_v0 }
  0xa5   :  { %643 = vmatmul.bf16.gmra.mxu3 %v362_v0  ;;  %v176_v0 = vld [vmem:[#allocation7 + $0x30] sm:$0xff] }
  0xa6   :  { %v242_v4 = vmul.f32 %v2847_v42, %v176_v0  ;;  %v278_v0 = vsub.f32 %v213_v59, %v246_v51  ;;  %v185_v59 = vld [vmem:[#allocation7 + $0x78] sm:$0xff]  ;;  %v218_v51 = vmul.f32 %v2844_v41, %v153_v57 }
  0xa8   :  { %v274_v7 = vsub.f32 %v209_v2, %v242_v4  ;;  %v303_v2 = vpack.c.bf16 %v2939_v63, %v2937_v62  ;;  %v353_v4 = vpack.c.bf16 %v279_v3, %v278_v0  ;;  %v3005_v62 = vld [vmem:[#allocation4 + $0x68] sm:$0xff]  ;;  %v182_v63 = vld [vmem:[#allocation7 + $0x60] sm:$0xff]  ;;  %v251_v0 = vmul.f32 %v2847_v42, %v185_v59 }
  0xa9   :  { %v216_v16 = vmul.f32 %v2844_v41, %v3005_v62  ;;  %v248_v24 = vmul.f32 %v2847_v42, %v182_v63  ;;  %329 = vst [vmem:[#allocation15 + $0x68] sm:$0xff] %v3005_v62  ;;  %v282_v3 = vsub.f32 %v217_v50, %v250_v60  ;;  %v2485_v60 = vld [vmem:[#allocation13 + $0x38] sm:$0xff] }
  0xaa   :  { %v351_v11 = vpack.c.bf16 %v275_v10, %v274_v7  ;;  %v2453_v10 = vld [vmem:[#allocation12 + $0x34] sm:$0xf0] }
  0xac   :  { %499 = vmatmul.bf16.gmra.mxu0 %v351_v11  ;;  %588 = vmatmul.bf16.gmra.mxu1 %v351_v11  ;;  %v2312_v11 = vld [vmem:[#allocation12 + $0xb0] sm:$0xf] }
  0xad   :  { %v2313_v18 = vor.u32 %v2469_v17, %v2312_v11  ;;  %v2449_v17 = vld [vmem:[#allocation12 + $0x14] sm:$0xf0] }
  0xaf   :  { %1369 = vmatpush.bf16.msrb.mxu1 %v2313_v18  ;;  %v2296_v18 = vld [vmem:[#allocation12 + $0x90] sm:$0xf] }
  0xb4   :  { %559 = vmatmul.bf16.gmra.mxu2 %v363_v25 }
  0xb5   :  { %648 = vmatmul.bf16.gmra.mxu3 %v363_v25  ;;  %v211_v25 = vmul.f32 %v2844_v41, %v2959_v23 }
  0xb7   :  { %v276_v32 = vsub.f32 %v211_v25, %v244_v27  ;;  %v249_v25 = vmul.f32 %v2847_v42, %v183_v20  ;;  %v280_v27 = vsub.f32 %v215_v21, %v248_v24  ;;  %v2232_v42 = vld [vmem:[#allocation12 + $0x10] sm:$0xf]  ;;  %v2465_v20 = vld [vmem:[#allocation12 + $0x94] sm:$0xf0]  ;;  %v2452_v24 = vld [vmem:[#allocation12 + $0x34] sm:$0xf] }
  0xb8   :  { %v2233_v63 = vor.u32 %v2449_v17, %v2232_v42  ;;  %v2297_v21 = vor.u32 %v2465_v20, %v2296_v18  ;;  %v2450_v42 = vld [vmem:[#allocation12 + $0x24] sm:$0xf]  ;;  %v2242_v17 = vld [vmem:[#allocation12 + $0x28] sm:$0xf0] }
  0xb9   :  { %v352_v31 = vpack.c.bf16 %v277_v28, %v276_v32  ;;  %v304_v32 = vpack.c.bf16 %v2961_v15, %v2959_v23  ;;  %v2304_v23 = vld [vmem:[#allocation12 + $0xa0] sm:$0xf]  ;;  %v2467_v15 = vld [vmem:[#allocation12 + $0xa4] sm:$0xf0]  ;;  %v2245_v18 = vor.u32 %v2450_v42, %v2242_v17 }
  0xba   :  { %v2305_v46 = vor.u32 %v2467_v15, %v2304_v23 }
  0xbc   :  { %504 = vmatmul.bf16.gmra.mxu0 %v352_v31  ;;  %593 = vmatmul.bf16.gmra.mxu1 %v352_v31  ;;  %v2454_v31 = vld [vmem:[#allocation12 + $0x44] sm:$0xf] }
  0xbd   :  { %v2261_v38 = vor.u32 %v2454_v31, %v2258_v37  ;;  %1370 = vmatpush.bf16.msrb.mxu1 %v2305_v46  ;;  %v2224_v37 = vld [vmem:[#allocation12] sm:$0xf] }
  0xbf   :  { %1457 = vmatpush.bf16.msra.mxu2 %v2261_v38  ;;  %v2447_v38 = vld [vmem:[#allocation12 + $0x4] sm:$0xf0] }
  0xc1   :  { %1371 = vmatpush.bf16.msrb.mxu1 %v2297_v21 }
  0xc4   :  { %742 = vmatmul.bf16.vlgmr.msrb.gmra.mxu2 %v300_v45 }
  0xc5   :  { %831 = vmatmul.bf16.vlgmr.msrb.gmra.mxu3 %v300_v45  ;;  %v2455_v45 = vld [vmem:[#allocation12 + $0x44] sm:$0xf0] }
  0xc6   :  { %v2257_v48 = vor.u32 %v2455_v45, %v2256_v44  ;;  %v2240_v45 = vld [vmem:[#allocation12 + $0x20] sm:$0xf] }
  0xc7   :  { %v2933_v54 = vpop.f32.mrf.mxu2  ;;  %v2241_v52 = vor.u32 %v2451_v47, %v2240_v45  ;;  %v2468_v45 = vld [vmem:[#allocation12 + $0xb4] sm:$0xf]  ;;  %v2225_v47 = vor.u32 %v2447_v38, %v2224_v37 }
  0xc8   :  { %v2935_v55 = vpop.f32.mrf.mxu3  ;;  %1279 = vmatpush.bf16.msrb.mxu0 %v2257_v48  ;;  %v2470_v48 = vld [vmem:[#allocation12 + $0xc4] sm:$0xf] }
  0xc9   :  { %v2325_v36 = vor.u32 %v2470_v48, %v2322_v35  ;;  %v2314_v48 = vld [vmem:[#allocation12 + $0xb8] sm:$0xf0]  ;;  %v2463_v35 = vld [vmem:[#allocation12 + $0x84] sm:$0xf0] }
  0xcb   :  { %1546 = vmatpush.bf16.msra.mxu3 %v2325_v36  ;;  %v307_v36 = vpack.c.bf16 %v153_v57, %v152_v53  ;;  %v2523_v57 = vld [vmem:[#allocation15 + $0x80] sm:$0xff] }
  0xcc   :  { %509 = vmatmul.bf16.gmra.mxu0 %v353_v4  ;;  %598 = vmatmul.bf16.gmra.mxu1 %v353_v4 }
  0xcf   :  { %v2949_v6 = vpop.f32.mrf.mxu2 }
  0xd0   :  { %v2951_v8 = vpop.f32.mrf.mxu3 }
  0xd4   :  { %747 = vmatmul.bf16.gmra.mxu2 %v301_v9 }
  0xd5   :  { %836 = vmatmul.bf16.gmra.mxu3 %v301_v9  ;;  %v2248_v9 = vld [vmem:[#allocation12 + $0x30] sm:$0xf] }
  0xd6   :  { %v2249_v14 = vor.u32 %v2453_v10, %v2248_v9  ;;  %v305_v9 = vpack.c.bf16 %v2983_v49, %v2981_v56  ;;  %v283_v10 = vsub.f32 %v218_v51, %v251_v0  ;;  %v306_v49 = vpack.c.bf16 %v3005_v62, %v3003_v19  ;;  %v2493_v0 = vld [vmem:[#allocation13 + $0x78] sm:$0xff] }
  0xd7   :  { %v2955_v12 = vpop.f32.mrf.mxu2  ;;  %v2317_v62 = vor.u32 %v2468_v45, %v2314_v48  ;;  %v2466_v45 = vld [vmem:[#allocation12 + $0xa4] sm:$0xf] }
  0xd8   :  { %v2957_v13 = vpop.f32.mrf.mxu3  ;;  %1280 = vmatpush.bf16.msrb.mxu0 %v2249_v14  ;;  %v355_v11 = vpack.c.bf16 %v283_v10, %v282_v3  ;;  %v2524_v10 = vld [vmem:[#allocation15 + $0x88] sm:$0xff] }
  0xd9   :  { %1547 = vmatpush.bf16.msra.mxu3 %v2317_v62 }
  0xdc   :  { %1281 = vmatpush.bf16.msrb.mxu0 %v2241_v52  ;;  %v2288_v52 = vld [vmem:[#allocation12 + $0x80] sm:$0xf] }
  0xdd   :  { %v2289_v23 = vor.u32 %v2463_v35, %v2288_v52 }
  0xdf   :  { %v2971_v30 = vpop.f32.mrf.mxu2  ;;  %1372 = vmatpush.bf16.msrb.mxu1 %v2289_v23 }
  0xe0   :  { %v2973_v33 = vpop.f32.mrf.mxu3  ;;  %1282 = vmatpush.bf16.msrb.mxu0 %v2233_v63 }
  0xe3   :  { %1949 = vmatpush.bf16.msra.mxu1 %v2493_v0 }
  0xe4   :  { %752 = vmatmul.bf16.gmra.mxu2 %v302_v34  ;;  %1283 = vmatpush.bf16.msrb.mxu0 %v2225_v47  ;;  %v2306_v47 = vld [vmem:[#allocation12 + $0xa8] sm:$0xf0] }
  0xe5   :  { %841 = vmatmul.bf16.gmra.mxu3 %v302_v34  ;;  %v281_v34 = vsub.f32 %v216_v16, %v249_v25  ;;  %v2250_v25 = vld [vmem:[#allocation12 + $0x38] sm:$0xf0]  ;;  %v2309_v48 = vor.u32 %v2466_v45, %v2306_v47 }
  0xe7   :  { %v2977_v40 = vpop.f32.mrf.mxu2  ;;  %v354_v28 = vpack.c.bf16 %v281_v34, %v280_v27  ;;  %v2253_v27 = vor.u32 %v2452_v24, %v2250_v25  ;;  %v912_v24 = vld [vmem:[%s3464_s5] sm:$0x3]  ;;  %1548 = vmatpush.bf16.msra.mxu3 %v2309_v48 }
  0xe8   :  { %v2979_v43 = vpop.f32.mrf.mxu3  ;;  %1860 = vmatpush.bf16.msra.mxu0 %v2485_v60  ;;  %v3066_v38 = vperm.slane %v912_v24, 1  ;;  %v2526_v60 = vld [vmem:[#allocation15 + $0x98] sm:$0xff] }
  0xe9   :  { %514 = vmatmul.bf16.gmra.mxu0 %v354_v28  ;;  %603 = vmatmul.bf16.gmra.mxu1 %v354_v28  ;;  %v485_v28 = vpop.f32.mrf.mxu0  ;;  %v574_v31 = vpop.f32.mrf.mxu1 }
  0xea   :  { %1458 = vmatpush.bf16.msra.mxu2 %v2253_v27  ;;  %v3064_v27 = vperm.slane %v912_v24, 0 }
  0xee   :  { %1459 = vmatpush.bf16.msra.mxu2 %v2245_v18 }
  0xef   :  { %v2993_v61 = vpop.f32.mrf.mxu2 }
  0xf0   :  { %v2995_v1 = vpop.f32.mrf.mxu3 }
  0xf1   :  { %v487_v46 = vpop.f32.mrf.mxu0  ;;  %v576_v58 = vpop.f32.mrf.mxu1 }
  0xf4   :  { %757 = vmatmul.bf16.gmra.mxu2 %v303_v2 }
  0xf5   :  { %846 = vmatmul.bf16.gmra.mxu3 %v303_v2 }
  0xf7   :  { %v2999_v5 = vpop.f32.mrf.mxu2 }
  0xf8   :  { %v3001_v7 = vpop.f32.mrf.mxu3 }
  0xf9   :  { %519 = vmatmul.bf16.gmra.mxu0 %v355_v11  ;;  %608 = vmatmul.bf16.gmra.mxu1 %v355_v11  ;;  %v308_v11 = vpack.c.bf16 %v2524_v10, %v2523_v57 }
  0xff   :  { %v3015_v26 = vpop.f32.mrf.mxu2 }
 0x100   :  { %v3017_v29 = vpop.f32.mrf.mxu3 }
 0x104   :  { %762 = vmatmul.bf16.gmra.mxu2 %v304_v32 }
 0x105   :  { %851 = vmatmul.bf16.gmra.mxu3 %v304_v32 }
 0x107   :  { %v3021_v39 = vpop.f32.mrf.mxu2 }
 0x108   :  { %v3023_v44 = vpop.f32.mrf.mxu3 }
 0x109   :  { %v490_v51 = vpop.f32.mrf.mxu0  ;;  %v579_v3 = vpop.f32.mrf.mxu1 }
 0x10f   :  { %v3029_v2 = vpop.f32.mrf.mxu2 }
 0x110   :  { %v3031_v4 = vpop.f32.mrf.mxu3 }
 0x111   :  { %v492_v20 = vpop.f32.mrf.mxu0 }
 0x114   :  { %767 = vmatmul.bf16.gmra.mxu2 %v305_v9 }
 0x115   :  { %856 = vmatmul.bf16.gmra.mxu3 %v305_v9 }
 0x117   :  { %v3035_v41 = vpop.f32.mrf.mxu2 }
 0x118   :  { %v3037_v14 = vpop.f32.mrf.mxu3 }
 0x119   :  { %v495_v10 = vpop.f32.mrf.mxu0 }
 0x11f   :  { %v3039_v16 = vpop.f32.mrf.mxu2 }
 0x120   :  { %v3041_v56 = vpop.f32.mrf.mxu3 }
 0x124   :  { %772 = vmatmul.bf16.gmra.mxu2 %v306_v49 }
 0x125   :  { %861 = vmatmul.bf16.gmra.mxu3 %v306_v49  ;;  %v581_v49 = vpop.f32.mrf.mxu1 }
 0x127   :  { %v3045_v32 = vpop.f32.mrf.mxu2 }
 0x128   :  { %v3047_v34 = vpop.f32.mrf.mxu3 }
 0x12f   :  { %v3049_v19 = vpop.f32.mrf.mxu2 }
 0x130   :  { %v3051_v15 = vpop.f32.mrf.mxu3 }
 0x134   :  { %777 = vmatmul.bf16.gmra.mxu2 %v307_v36 }
 0x135   :  { %866 = vmatmul.bf16.gmra.mxu3 %v307_v36  ;;  %v2525_v36 = vld [vmem:[#allocation15 + $0x90] sm:$0xff] }
 0x136   :  { %v309_v0 = vpack.c.bf16 %v2526_v60, %v2525_v36 }
 0x137   :  { %v3053_v59 = vpop.f32.mrf.mxu2 }
 0x138   :  { %v3055_v50 = vpop.f32.mrf.mxu3 }
 0x139   :  { %3470 = vst [vmem:[#allocation22_spill] sm:$0xff] %v3055_v50 }
 0x13f   :  { %v3057_v9 = vpop.f32.mrf.mxu2 }
 0x140   :  { %3471 = vst [vmem:[#allocation23_spill] sm:$0xff] %v3057_v9  ;;  %v3059_v53 = vpop.f32.mrf.mxu3 }
 0x141   :  { %3472 = vst [vmem:[#allocation24_spill] sm:$0xff] %v3059_v53 }
 0x144   :  { %782 = vmatmul.bf16.gmra.mxu2 %v308_v11 }
 0x145   :  { %871 = vmatmul.bf16.gmra.mxu3 %v308_v11  ;;  %v584_v11 = vpop.f32.mrf.mxu1 }
 0x147   :  { %v743_v63 = vpop.f32.mrf.mxu2 }
 0x148   :  { %v832_v21 = vpop.f32.mrf.mxu3  ;;  %v744_v25 = vadd.f32 %v743_v63, %v485_v28 }
 0x149   :  { %v833_v37 = vadd.f32 %v832_v21, %v574_v31 }
 0x14a   :  { %v918_v35 = vadd.f32 %v3064_v27, %v744_v25 }
 0x14b   :  { %v919_v57 = vadd.f32 %v3066_v38, %v833_v37 }
 0x14c   :  { %v982_v17 = vmax.f32 %v918_v35, 0.0  ;;  %v2492_v35 = vld [vmem:[#allocation13 + $0x70] sm:$0xff] }
 0x14d   :  { %v983_v63 = vmax.f32 %v919_v57, 0.0  ;;  %v586_v47 = vpop.f32.mrf.mxu1  ;;  %1950 = vmatpush.bf16.msra.mxu1 %v2492_v35  ;;  %v2528_v57 = vld [vmem:[#allocation15 + $0xa8] sm:$0xff] }
 0x14f   :  { %v745_v52 = vpop.f32.mrf.mxu2 }
 0x150   :  { %v746_v62 = vadd.f32 %v745_v52, %v487_v46  ;;  %v834_v23 = vpop.f32.mrf.mxu3  ;;  %v2484_v52 = vld [vmem:[#allocation13 + $0x30] sm:$0xff] }
 0x151   :  { %v835_v28 = vadd.f32 %v834_v23, %v576_v58  ;;  %v497_v58 = vpop.f32.mrf.mxu0  ;;  %1861 = vmatpush.bf16.msra.mxu0 %v2484_v52 }
 0x152   :  { %v920_v31 = vadd.f32 %v3064_v27, %v746_v62 }
 0x153   :  { %v921_v42 = vadd.f32 %v3066_v38, %v835_v28 }
 0x154   :  { %v984_v18 = vmax.f32 %v920_v31, 0.0  ;;  %787 = vmatmul.bf16.gmra.mxu2 %v309_v0 }
 0x155   :  { %v985_v21 = vmax.f32 %v921_v42, 0.0  ;;  %876 = vmatmul.bf16.gmra.mxu3 %v309_v0  ;;  %v2527_v0 = vld [vmem:[#allocation15 + $0xa0] sm:$0xff]  ;;  %v589_v52 = vpop.f32.mrf.mxu1 }
 0x156   :  { %v3072_v46 = vpack.c.bf16 %v984_v18, %v982_v17  ;;  %v310_v28 = vpack.c.bf16 %v2528_v57, %v2527_v0  ;;  %v2298_v0 = vld [vmem:[#allocation12 + $0x98] sm:$0xf0] }
 0x157   :  { %v748_v24 = vpop.f32.mrf.mxu2  ;;  %v3074_v25 = vpack.c.bf16 %v985_v21, %v983_v63 }
 0x158   :  { %v837_v45 = vpop.f32.mrf.mxu3  ;;  %1284 = vmatmul.bf16.vlgmr.msrb.gmra.mxu0 %v3072_v46  ;;  %v749_v37 = vadd.f32 %v748_v24, %v490_v51 }
 0x159   :  { %1373 = vmatmul.bf16.vlgmr.msrb.gmra.mxu1 %v3074_v25  ;;  %v838_v48 = vadd.f32 %v837_v45, %v579_v3  ;;  %v500_v24 = vpop.f32.mrf.mxu0  ;;  %v2448_v45 = vld [vmem:[#allocation12 + $0x14] sm:$0xf] }
 0x15a   :  { %v922_v23 = vadd.f32 %v3064_v27, %v749_v37 }
 0x15b   :  { %v923_v31 = vadd.f32 %v3066_v38, %v838_v48 }
 0x15c   :  { %v986_v3 = vmax.f32 %v922_v23, 0.0 }
 0x15d   :  { %v987_v63 = vmax.f32 %v923_v31, 0.0 }
 0x15f   :  { %v750_v62 = vpop.f32.mrf.mxu2 }
 0x160   :  { %v751_v36 = vadd.f32 %v750_v62, %v492_v20  ;;  %v839_v60 = vpop.f32.mrf.mxu3  ;;  %v2234_v20 = vld [vmem:[#allocation12 + $0x18] sm:$0xf0] }
 0x161   :  { %v840_v42 = vadd.f32 %v839_v60, %v581_v49  ;;  %v2237_v35 = vor.u32 %v2448_v45, %v2234_v20  ;;  %v2464_v60 = vld [vmem:[#allocation12 + $0x94] sm:$0xf]  ;;  %v502_v31 = vpop.f32.mrf.mxu0 }
 0x162   :  { %v924_v17 = vadd.f32 %v3064_v27, %v751_v36  ;;  %v2301_v57 = vor.u32 %v2464_v60, %v2298_v0 }
 0x163   :  { %v925_v51 = vadd.f32 %v3066_v38, %v840_v42  ;;  %1460 = vmatpush.bf16.msra.mxu2 %v2237_v35 }
 0x164   :  { %792 = vmatmul.bf16.gmra.mxu2 %v310_v28  ;;  %v988_v18 = vmax.f32 %v924_v17, 0.0  ;;  %1549 = vmatpush.bf16.msra.mxu3 %v2301_v57 }
 0x165   :  { %881 = vmatmul.bf16.gmra.mxu3 %v310_v28  ;;  %v989_v21 = vmax.f32 %v925_v51, 0.0 }
 0x166   :  { %v3082_v37 = vpack.c.bf16 %v988_v18, %v986_v3  ;;  %v2529_v3 = vld [vmem:[#allocation15 + $0xb0] sm:$0xff] }
 0x167   :  { %v753_v62 = vpop.f32.mrf.mxu2  ;;  %v3084_v48 = vpack.c.bf16 %v989_v21, %v987_v63  ;;  %v311_v18 = vpack.c.bf16 %v2859_v22, %v2529_v3  ;;  %v591_v63 = vpop.f32.mrf.mxu1 }
 0x168   :  { %v842_v49 = vpop.f32.mrf.mxu3  ;;  %1289 = vmatmul.bf16.gmra.mxu0 %v3082_v37  ;;  %v754_v23 = vadd.f32 %v753_v62, %v495_v10 }
 0x169   :  { %1378 = vmatmul.bf16.gmra.mxu1 %v3084_v48  ;;  %v843_v36 = vadd.f32 %v842_v49, %v584_v11 }
 0x16a   :  { %v926_v42 = vadd.f32 %v3064_v27, %v754_v23 }
 0x16b   :  { %v927_v21 = vadd.f32 %v3066_v38, %v843_v36 }
 0x16c   :  { %v990_v20 = vmax.f32 %v926_v42, 0.0  ;;  %v2491_v42 = vld [vmem:[#allocation13 + $0x68] sm:$0xff] }
 0x16d   :  { %v991_v62 = vmax.f32 %v927_v21, 0.0  ;;  %1951 = vmatpush.bf16.msra.mxu1 %v2491_v42  ;;  %v2530_v21 = vld [vmem:[#allocation15 + $0xc0] sm:$0xff] }
 0x16f   :  { %v755_v28 = vpop.f32.mrf.mxu2  ;;  %v594_v36 = vpop.f32.mrf.mxu1 }
 0x170   :  { %v756_v17 = vadd.f32 %v755_v28, %v497_v58  ;;  %v844_v51 = vpop.f32.mrf.mxu3  ;;  %v2483_v28 = vld [vmem:[#allocation13 + $0x28] sm:$0xff] }
 0x171   :  { %v845_v45 = vadd.f32 %v844_v51, %v586_v47  ;;  %v505_v47 = vpop.f32.mrf.mxu0  ;;  %1862 = vmatpush.bf16.msra.mxu0 %v2483_v28  ;;  %v2226_v28 = vld [vmem:[#allocation12 + $0x8] sm:$0xf0] }
 0x172   :  { %v928_v10 = vadd.f32 %v3064_v27, %v756_v17 }
 0x173   :  { %v929_v11 = vadd.f32 %v3066_v38, %v845_v45  ;;  %v2531_v45 = vld [vmem:[#allocation15 + $0xc8] sm:$0xff] }
 0x174   :  { %797 = vmatmul.bf16.gmra.mxu2 %v311_v18  ;;  %v992_v35 = vmax.f32 %v928_v10, 0.0  ;;  %v312_v10 = vpack.c.bf16 %v2531_v45, %v2530_v21  ;;  %v2462_v45 = vld [vmem:[#allocation12 + $0x84] sm:$0xf] }
 0x175   :  { %886 = vmatmul.bf16.gmra.mxu3 %v311_v18  ;;  %v993_v49 = vmax.f32 %v929_v11, 0.0 }
 0x176   :  { %v3093_v58 = vpack.c.bf16 %v992_v35, %v990_v20 }
 0x177   :  { %v758_v23 = vpop.f32.mrf.mxu2  ;;  %v3095_v60 = vpack.c.bf16 %v993_v49, %v991_v62 }
 0x178   :  { %v847_v22 = vpop.f32.mrf.mxu3  ;;  %1294 = vmatmul.bf16.gmra.mxu0 %v3093_v58  ;;  %v759_v0 = vadd.f32 %v758_v23, %v500_v24  ;;  %v596_v23 = vpop.f32.mrf.mxu1 }
 0x179   :  { %1383 = vmatmul.bf16.gmra.mxu1 %v3095_v60  ;;  %v848_v57 = vadd.f32 %v847_v22, %v589_v52  ;;  %v507_v52 = vpop.f32.mrf.mxu0 }
 0x17a   :  { %v930_v51 = vadd.f32 %v3064_v27, %v759_v0 }
 0x17b   :  { %v931_v11 = vadd.f32 %v3066_v38, %v848_v57 }
 0x17c   :  { %v994_v62 = vmax.f32 %v930_v51, 0.0 }
 0x17d   :  { %v995_v22 = vmax.f32 %v931_v11, 0.0 }
 0x17f   :  { %v760_v17 = vpop.f32.mrf.mxu2 }
 0x180   :  { %v761_v3 = vadd.f32 %v760_v17, %v502_v31  ;;  %v849_v18 = vpop.f32.mrf.mxu3  ;;  %v2446_v31 = vld [vmem:[#allocation12 + $0x4] sm:$0xf]  ;;  %v599_v11 = vpop.f32.mrf.mxu1 }
 0x181   :  { %v850_v20 = vadd.f32 %v849_v18, %v591_v63  ;;  %v2229_v17 = vor.u32 %v2446_v31, %v2226_v28  ;;  %v510_v18 = vpop.f32.mrf.mxu0 }
 0x182   :  { %v932_v35 = vadd.f32 %v3064_v27, %v761_v3 }
 0x183   :  { %v933_v24 = vadd.f32 %v3066_v38, %v850_v20  ;;  %1461 = vmatpush.bf16.msra.mxu2 %v2229_v17 }
 0x184   :  { %802 = vmatmul.bf16.gmra.mxu2 %v312_v10  ;;  %v996_v49 = vmax.f32 %v932_v35, 0.0 }
 0x185   :  { %891 = vmatmul.bf16.gmra.mxu3 %v312_v10  ;;  %v997_v0 = vmax.f32 %v933_v24, 0.0  ;;  %v2290_v10 = vld [vmem:[#allocation12 + $0x88] sm:$0xf0] }
 0x186   :  { %v3103_v42 = vpack.c.bf16 %v996_v49, %v994_v62  ;;  %v2293_v20 = vor.u32 %v2462_v45, %v2290_v10 }
 0x187   :  { %v763_v21 = vpop.f32.mrf.mxu2  ;;  %v3105_v57 = vpack.c.bf16 %v997_v0, %v995_v22  ;;  %v2532_v22 = vld [vmem:[#allocation15 + $0xd0] sm:$0xff]  ;;  %v2533_v0 = vld [vmem:[#allocation15 + $0xd8] sm:$0xff] }
 0x188   :  { %v852_v63 = vpop.f32.mrf.mxu3  ;;  %1299 = vmatmul.bf16.gmra.mxu0 %v3103_v42  ;;  %v764_v51 = vadd.f32 %v763_v21, %v505_v47  ;;  %v313_v31 = vpack.c.bf16 %v2533_v0, %v2532_v22  ;;  %1550 = vmatpush.bf16.msra.mxu3 %v2293_v20 }
 0x189   :  { %1388 = vmatmul.bf16.gmra.mxu1 %v3105_v57  ;;  %v853_v3 = vadd.f32 %v852_v63, %v594_v36 }
 0x18a   :  { %v934_v24 = vadd.f32 %v3064_v27, %v764_v51 }
 0x18b   :  { %v935_v28 = vadd.f32 %v3066_v38, %v853_v3 }
 0x18c   :  { %v998_v21 = vmax.f32 %v934_v24, 0.0  ;;  %v2482_v24 = vld [vmem:[#allocation13 + $0x20] sm:$0xff] }
 0x18d   :  { %v999_v45 = vmax.f32 %v935_v28, 0.0  ;;  %1863 = vmatpush.bf16.msra.mxu0 %v2482_v24 }
 0x18f   :  { %v765_v35 = vpop.f32.mrf.mxu2 }
 0x190   :  { %v766_v62 = vadd.f32 %v765_v35, %v507_v52  ;;  %v854_v49 = vpop.f32.mrf.mxu3  ;;  %v512_v52 = vpop.f32.mrf.mxu0 }
 0x191   :  { %v855_v17 = vadd.f32 %v854_v49, %v596_v23  ;;  %v601_v23 = vpop.f32.mrf.mxu1  ;;  %v2490_v49 = vld [vmem:[#allocation13 + $0x60] sm:$0xff] }
 0x192   :  { %v936_v47 = vadd.f32 %v3064_v27, %v766_v62  ;;  %1952 = vmatpush.bf16.msra.mxu1 %v2490_v49 }
 0x193   :  { %v937_v36 = vadd.f32 %v3066_v38, %v855_v17  ;;  %v2534_v17 = vld [vmem:[#allocation15 + $0xe0] sm:$0xff] }
 0x194   :  { %v1000_v63 = vmax.f32 %v936_v47, 0.0  ;;  %807 = vmatmul.bf16.gmra.mxu2 %v313_v31  ;;  %v2535_v47 = vld [vmem:[#allocation15 + $0xe8] sm:$0xff] }
 0x195   :  { %v1001_v10 = vmax.f32 %v937_v36, 0.0  ;;  %896 = vmatmul.bf16.gmra.mxu3 %v313_v31  ;;  %v314_v36 = vpack.c.bf16 %v2535_v47, %v2534_v17 }
 0x196   :  { %v3113_v51 = vpack.c.bf16 %v1000_v63, %v998_v21 }
 0x197   :  { %v768_v35 = vpop.f32.mrf.mxu2  ;;  %v3115_v53 = vpack.c.bf16 %v1001_v10, %v999_v45 }
 0x198   :  { %v857_v20 = vpop.f32.mrf.mxu3  ;;  %1304 = vmatmul.bf16.gmra.mxu0 %v3113_v51  ;;  %v769_v3 = vadd.f32 %v768_v35, %v510_v18  ;;  %v515_v63 = vpop.f32.mrf.mxu0 }
 0x199   :  { %1393 = vmatmul.bf16.gmra.mxu1 %v3115_v53  ;;  %v858_v62 = vadd.f32 %v857_v20, %v599_v11  ;;  %v604_v18 = vpop.f32.mrf.mxu1 }
 0x19a   :  { %v938_v0 = vadd.f32 %v3064_v27, %v769_v3 }
 0x19b   :  { %v939_v21 = vadd.f32 %v3066_v38, %v858_v62 }
 0x19c   :  { %v1002_v35 = vmax.f32 %v938_v0, 0.0 }
 0x19d   :  { %v1003_v24 = vmax.f32 %v939_v21, 0.0 }
 0x19f   :  { %v770_v22 = vpop.f32.mrf.mxu2 }
 0x1a0   :  { %v771_v31 = vadd.f32 %v770_v22, %v512_v52  ;;  %v859_v28 = vpop.f32.mrf.mxu3 }
 0x1a1   :  { %v860_v45 = vadd.f32 %v859_v28, %v601_v23  ;;  %v517_v23 = vpop.f32.mrf.mxu0 }
 0x1a2   :  { %v940_v10 = vadd.f32 %v3064_v27, %v771_v31  ;;  %v606_v31 = vpop.f32.mrf.mxu1 }
 0x1a3   :  { %v941_v11 = vadd.f32 %v3066_v38, %v860_v45 }
 0x1a4   :  { %v1004_v20 = vmax.f32 %v940_v10, 0.0  ;;  %812 = vmatmul.bf16.gmra.mxu2 %v314_v36  ;;  %v2537_v10 = vld [vmem:[#allocation15 + $0xf8] sm:$0xff] }
 0x1a5   :  { %v1005_v49 = vmax.f32 %v941_v11, 0.0  ;;  %901 = vmatmul.bf16.gmra.mxu3 %v314_v36  ;;  %v2536_v36 = vld [vmem:[#allocation15 + $0xf0] sm:$0xff] }
 0x1a6   :  { %v3123_v52 = vpack.c.bf16 %v1004_v20, %v1002_v35  ;;  %v315_v11 = vpack.c.bf16 %v2537_v10, %v2536_v36 }
 0x1a7   :  { %v773_v3 = vpop.f32.mrf.mxu2  ;;  %v3125_v22 = vpack.c.bf16 %v1005_v49, %v1003_v24 }
 0x1a8   :  { %v862_v17 = vpop.f32.mrf.mxu3  ;;  %1309 = vmatmul.bf16.gmra.mxu0 %v3123_v52  ;;  %v774_v62 = vadd.f32 %v773_v3, %v515_v63 }
 0x1a9   :  { %1398 = vmatmul.bf16.gmra.mxu1 %v3125_v22  ;;  %v863_v28 = vadd.f32 %v862_v17, %v604_v18  ;;  %v520_v18 = vpop.f32.mrf.mxu0 }
 0x1aa   :  { %v942_v47 = vadd.f32 %v3064_v27, %v774_v62  ;;  %v609_v17 = vpop.f32.mrf.mxu1 }
 0x1ab   :  { %v943_v35 = vadd.f32 %v3066_v38, %v863_v28 }
 0x1ac   :  { %v1006_v9 = vmax.f32 %v942_v47, 0.0  ;;  %v2481_v47 = vld [vmem:[#allocation13 + $0x18] sm:$0xff] }
 0x1ad   :  { %v1007_v63 = vmax.f32 %v943_v35, 0.0  ;;  %1864 = vmatpush.bf16.msra.mxu0 %v2481_v47 }
 0x1af   :  { %v775_v0 = vpop.f32.mrf.mxu2 }
 0x1b0   :  { %v776_v21 = vadd.f32 %v775_v0, %v517_v23  ;;  %v864_v45 = vpop.f32.mrf.mxu3 }
 0x1b1   :  { %v865_v20 = vadd.f32 %v864_v45, %v606_v31  ;;  %v522_v45 = vpop.f32.mrf.mxu0 }
 0x1b2   :  { %v944_v24 = vadd.f32 %v3064_v27, %v776_v21  ;;  %v2489_v21 = vld [vmem:[#allocation13 + $0x58] sm:$0xff] }
 0x1b3   :  { %v945_v49 = vadd.f32 %v3066_v38, %v865_v20  ;;  %1953 = vmatpush.bf16.msra.mxu1 %v2489_v21 }
 0x1b4   :  { %v1008_v50 = vmax.f32 %v944_v24, 0.0  ;;  %817 = vmatmul.bf16.gmra.mxu2 %v315_v11 }
 0x1b5   :  { %v1009_v3 = vmax.f32 %v945_v49, 0.0  ;;  %906 = vmatmul.bf16.gmra.mxu3 %v315_v11 }
 0x1b6   :  { %v3133_v23 = vpack.c.bf16 %v1008_v50, %v1006_v9  ;;  %v611_v50 = vpop.f32.mrf.mxu1 }
 0x1b7   :  { %v778_v62 = vpop.f32.mrf.mxu2  ;;  %v3135_v0 = vpack.c.bf16 %v1009_v3, %v1007_v63 }
 0x1b8   :  { %v867_v36 = vpop.f32.mrf.mxu3  ;;  %1314 = vmatmul.bf16.gmra.mxu0 %v3133_v23  ;;  %v779_v31 = vadd.f32 %v778_v62, %v520_v18 }
 0x1b9   :  { %1403 = vmatmul.bf16.gmra.mxu1 %v3135_v0  ;;  %v868_v28 = vadd.f32 %v867_v36, %v609_v17 }
 0x1ba   :  { %v946_v11 = vadd.f32 %v3064_v27, %v779_v31 }
 0x1bb   :  { %v947_v20 = vadd.f32 %v3066_v38, %v868_v28 }
 0x1bc   :  { %v1010_v18 = vmax.f32 %v946_v11, 0.0 }
 0x1bd   :  { %v1011_v17 = vmax.f32 %v947_v20, 0.0 }
 0x1bf   :  { %v780_v10 = vpop.f32.mrf.mxu2 }
 0x1c0   :  { %v781_v9 = vadd.f32 %v780_v10, %v522_v45  ;;  %v869_v35 = vpop.f32.mrf.mxu3 }
 0x1c1   :  { %v870_v24 = vadd.f32 %v869_v35, %v611_v50 }
 0x1c2   :  { %v948_v49 = vadd.f32 %v3064_v27, %v781_v9 }
 0x1c3   :  { %v949_v63 = vadd.f32 %v3066_v38, %v870_v24 }
 0x1c4   :  { %v1012_v3 = vmax.f32 %v948_v49, 0.0  ;;  %1462 = vmatmul.bf16.vlgmr.msra.gmra.mxu2 %v3072_v46  ;;  %v3156_v46 = vld [vmem:[%s3466_s7] sm:$0x3] }
 0x1c5   :  { %v1013_v62 = vmax.f32 %v949_v63, 0.0  ;;  %1551 = vmatmul.bf16.vlgmr.msra.gmra.mxu3 %v3074_v25 }
 0x1c6   :  { %v3145_v36 = vpack.c.bf16 %v1012_v3, %v1010_v18 }
 0x1c7   :  { %v783_v31 = vpop.f32.mrf.mxu2  ;;  %v3147_v47 = vpack.c.bf16 %v1013_v62, %v1011_v17 }
 0x1c8   :  { %v872_v21 = vpop.f32.mrf.mxu3  ;;  %1319 = vmatmul.bf16.gmra.mxu0 %v3145_v36  ;;  %v784_v28 = vadd.f32 %v783_v31, %v2933_v54  ;;  %v3164_v54 = vperm.slane %v3156_v46, 0 }
 0x1c9   :  { %1408 = vmatmul.bf16.gmra.mxu1 %v3147_v47  ;;  %v873_v45 = vadd.f32 %v872_v21, %v2935_v55 }
 0x1ca   :  { %v950_v25 = vadd.f32 %v3064_v27, %v784_v28 }
 0x1cb   :  { %v951_v9 = vadd.f32 %v3066_v38, %v873_v45 }
 0x1cc   :  { %v1014_v24 = vmax.f32 %v950_v25, 0.0  ;;  %v2488_v25 = vld [vmem:[#allocation13 + $0x50] sm:$0xff] }
 0x1cd   :  { %v1015_v63 = vmax.f32 %v951_v9, 0.0  ;;  %1954 = vmatpush.bf16.msra.mxu1 %v2488_v25 }
 0x1cf   :  { %v785_v10 = vpop.f32.mrf.mxu2 }
 0x1d0   :  { %v786_v11 = vadd.f32 %v785_v10, %v2949_v6  ;;  %v874_v50 = vpop.f32.mrf.mxu3  ;;  %v2480_v10 = vld [vmem:[#allocation13 + $0x10] sm:$0xff] }
 0x1d1   :  { %v875_v35 = vadd.f32 %v874_v50, %v2951_v8  ;;  %1865 = vmatpush.bf16.msra.mxu0 %v2480_v10 }
 0x1d2   :  { %v952_v20 = vadd.f32 %v3064_v27, %v786_v11 }
 0x1d3   :  { %v953_v55 = vadd.f32 %v3066_v38, %v875_v35 }
 0x1d4   :  { %v1016_v49 = vmax.f32 %v952_v20, 0.0  ;;  %1467 = vmatmul.bf16.gmra.mxu2 %v3082_v37 }
 0x1d5   :  { %v1017_v18 = vmax.f32 %v953_v55, 0.0  ;;  %1556 = vmatmul.bf16.gmra.mxu3 %v3084_v48  ;;  %v1285_v6 = vpop.f32.mrf.mxu0 }
 0x1d6   :  { %v1286_v3 = vadd.f32 %v1285_v6, %v3164_v54  ;;  %v1374_v17 = vpop.f32.mrf.mxu1  ;;  %v3170_v8 = vpack.c.bf16 %v1016_v49, %v1014_v24 }
 0x1d7   :  { %v788_v62 = vpop.f32.mrf.mxu2  ;;  %v3172_v31 = vpack.c.bf16 %v1017_v18, %v1015_v63 }
 0x1d8   :  { %v1375_v21 = vadd.f32 %v1374_v17, %v1286_v3  ;;  %v877_v28 = vpop.f32.mrf.mxu3  ;;  %1324 = vmatmul.bf16.gmra.mxu0 %v3170_v8  ;;  %v789_v37 = vadd.f32 %v788_v62, %v2955_v12 }
 0x1d9   :  { %1413 = vmatmul.bf16.gmra.mxu1 %v3172_v31  ;;  %v878_v45 = vadd.f32 %v877_v28, %v2957_v13 }
 0x1da   :  { %v954_v35 = vadd.f32 %v3064_v27, %v789_v37  ;;  %v1632_v13 = vmax.f32 %v1375_v21, 0.0 }
 0x1db   :  { %v955_v49 = vadd.f32 %v3066_v38, %v878_v45 }
 0x1dc   :  { %v1018_v3 = vmax.f32 %v954_v35, 0.0 }
 0x1dd   :  { %v1287_v48 = vpop.f32.mrf.mxu0  ;;  %v1019_v28 = vmax.f32 %v955_v49, 0.0 }
 0x1de   :  { %v1288_v11 = vadd.f32 %v1287_v48, %v3164_v54  ;;  %v1376_v50 = vpop.f32.mrf.mxu1 }
 0x1df   :  { %v790_v9 = vpop.f32.mrf.mxu2 }
 0x1e0   :  { %v1377_v20 = vadd.f32 %v1376_v50, %v1288_v11  ;;  %v791_v55 = vadd.f32 %v790_v9, %v2971_v30  ;;  %v879_v24 = vpop.f32.mrf.mxu3 }
 0x1e1   :  { %v880_v12 = vadd.f32 %v879_v24, %v2973_v33 }
 0x1e2   :  { %v1634_v63 = vmax.f32 %v1377_v20, 0.0  ;;  %v956_v18 = vadd.f32 %v3064_v27, %v791_v55 }
 0x1e3   :  { %v957_v6 = vadd.f32 %v3066_v38, %v880_v12 }
 0x1e4   :  { %v3185_v17 = vpack.c.bf16 %v1634_v63, %v1632_v13  ;;  %v1020_v62 = vmax.f32 %v956_v18, 0.0  ;;  %1472 = vmatmul.bf16.gmra.mxu2 %v3093_v58 }
 0x1e5   :  { %v1021_v37 = vmax.f32 %v957_v6, 0.0  ;;  %1561 = vmatmul.bf16.gmra.mxu3 %v3095_v60  ;;  %v1290_v30 = vpop.f32.mrf.mxu0 }
 0x1e6   :  { %v1291_v45 = vadd.f32 %v1290_v30, %v3164_v54  ;;  %v1379_v33 = vpop.f32.mrf.mxu1  ;;  %v3190_v21 = vpack.c.bf16 %v1020_v62, %v1018_v3 }
 0x1e7   :  { %v793_v48 = vpop.f32.mrf.mxu2  ;;  %v3192_v10 = vpack.c.bf16 %v1021_v37, %v1019_v28 }
 0x1e8   :  { %v1380_v25 = vadd.f32 %v1379_v33, %v1291_v45  ;;  %v882_v11 = vpop.f32.mrf.mxu3  ;;  %1329 = vmatmul.bf16.gmra.mxu0 %v3190_v21  ;;  %v794_v58 = vadd.f32 %v793_v48, %v2977_v40 }
 0x1e9   :  { %1418 = vmatmul.bf16.gmra.mxu1 %v3192_v10  ;;  %v883_v50 = vadd.f32 %v882_v11, %v2979_v43 }
 0x1ea   :  { %v958_v55 = vadd.f32 %v3064_v27, %v794_v58  ;;  %v1636_v18 = vmax.f32 %v1380_v25, 0.0 }
 0x1eb   :  { %v959_v13 = vadd.f32 %v3066_v38, %v883_v50 }
 0x1ec   :  { %v1022_v3 = vmax.f32 %v958_v55, 0.0 }
 0x1ed   :  { %v1292_v60 = vpop.f32.mrf.mxu0  ;;  %v1023_v37 = vmax.f32 %v959_v13, 0.0 }
 0x1ee   :  { %v1293_v9 = vadd.f32 %v1292_v60, %v3164_v54  ;;  %v1381_v35 = vpop.f32.mrf.mxu1  ;;  %v2479_v60 = vld [vmem:[#allocation13 + $0x8] sm:$0xff] }
 0x1ef   :  { %v795_v20 = vpop.f32.mrf.mxu2  ;;  %1866 = vmatpush.bf16.msra.mxu0 %v2479_v60 }
 0x1f0   :  { %v1382_v24 = vadd.f32 %v1381_v35, %v1293_v9  ;;  %v796_v49 = vadd.f32 %v795_v20, %v2993_v61  ;;  %v884_v12 = vpop.f32.mrf.mxu3  ;;  %v2487_v9 = vld [vmem:[#allocation13 + $0x48] sm:$0xff] }
 0x1f1   :  { %v885_v63 = vadd.f32 %v884_v12, %v2995_v1  ;;  %1955 = vmatpush.bf16.msra.mxu1 %v2487_v9 }
 0x1f2   :  { %v1638_v6 = vmax.f32 %v1382_v24, 0.0  ;;  %v960_v40 = vadd.f32 %v3064_v27, %v796_v49 }
 0x1f3   :  { %v961_v43 = vadd.f32 %v3066_v38, %v885_v63 }
 0x1f4   :  { %v1024_v62 = vmax.f32 %v960_v40, 0.0  ;;  %1477 = vmatmul.bf16.gmra.mxu2 %v3103_v42  ;;  %v3206_v28 = vpack.c.bf16 %v1638_v6, %v1636_v18 }
 0x1f5   :  { %v1025_v30 = vmax.f32 %v961_v43, 0.0  ;;  %1566 = vmatmul.bf16.gmra.mxu3 %v3105_v57  ;;  %v1295_v61 = vpop.f32.mrf.mxu0 }
 0x1f6   :  { %v1296_v45 = vadd.f32 %v1295_v61, %v3164_v54  ;;  %v1384_v1 = vpop.f32.mrf.mxu1  ;;  %v3210_v33 = vpack.c.bf16 %v1024_v62, %v1022_v3 }
 0x1f7   :  { %v798_v48 = vpop.f32.mrf.mxu2  ;;  %v3212_v25 = vpack.c.bf16 %v1025_v30, %v1023_v37 }
 0x1f8   :  { %v1385_v11 = vadd.f32 %v1384_v1, %v1296_v45  ;;  %v887_v58 = vpop.f32.mrf.mxu3  ;;  %1334 = vmatmul.bf16.gmra.mxu0 %v3210_v33  ;;  %v799_v42 = vadd.f32 %v798_v48, %v2999_v5 }
 0x1f9   :  { %1423 = vmatmul.bf16.gmra.mxu1 %v3212_v25  ;;  %v888_v50 = vadd.f32 %v887_v58, %v3001_v7 }
 0x1fa   :  { %v962_v24 = vadd.f32 %v3064_v27, %v799_v42  ;;  %v1640_v7 = vmax.f32 %v1385_v11, 0.0 }
 0x1fb   :  { %v963_v63 = vadd.f32 %v3066_v38, %v888_v50 }
 0x1fc   :  { %v1026_v43 = vmax.f32 %v962_v24, 0.0 }
 0x1fd   :  { %v1297_v57 = vpop.f32.mrf.mxu0  ;;  %v1027_v37 = vmax.f32 %v963_v63, 0.0 }
 0x1fe   :  { %v1298_v35 = vadd.f32 %v1297_v57, %v3164_v54  ;;  %v1386_v20 = vpop.f32.mrf.mxu1 }
 0x1ff   :  { %v800_v55 = vpop.f32.mrf.mxu2 }
 0x200   :  { %v1387_v49 = vadd.f32 %v1386_v20, %v1298_v35  ;;  %v801_v12 = vadd.f32 %v800_v55, %v3015_v26  ;;  %v889_v13 = vpop.f32.mrf.mxu3 }
 0x201   :  { %v890_v5 = vadd.f32 %v889_v13, %v3017_v29 }
 0x202   :  { %v1642_v18 = vmax.f32 %v1387_v49, 0.0  ;;  %v964_v6 = vadd.f32 %v3064_v27, %v801_v12 }
 0x203   :  { %v965_v40 = vadd.f32 %v3066_v38, %v890_v5 }
 0x204   :  { %v1028_v3 = vmax.f32 %v964_v6, 0.0  ;;  %1482 = vmatmul.bf16.gmra.mxu2 %v3113_v51  ;;  %v3226_v62 = vpack.c.bf16 %v1642_v18, %v1640_v7 }
 0x205   :  { %v1029_v30 = vmax.f32 %v965_v40, 0.0  ;;  %1571 = vmatmul.bf16.gmra.mxu3 %v3115_v53  ;;  %v1300_v26 = vpop.f32.mrf.mxu0 }
 0x206   :  { %v1301_v61 = vadd.f32 %v1300_v26, %v3164_v54  ;;  %v1389_v29 = vpop.f32.mrf.mxu1  ;;  %v3230_v45 = vpack.c.bf16 %v1028_v3, %v1026_v43 }
 0x207   :  { %v803_v1 = vpop.f32.mrf.mxu2  ;;  %v3232_v48 = vpack.c.bf16 %v1029_v30, %v1027_v37 }
 0x208   :  { %v1390_v11 = vadd.f32 %v1389_v29, %v1301_v61  ;;  %v892_v58 = vpop.f32.mrf.mxu3  ;;  %1339 = vmatmul.bf16.gmra.mxu0 %v3230_v45  ;;  %v804_v51 = vadd.f32 %v803_v1, %v3021_v39  ;;  %v2478_v29 = vld [vmem:[#allocation13] sm:$0xff] }
 0x209   :  { %1428 = vmatmul.bf16.gmra.mxu1 %v3232_v48  ;;  %v893_v42 = vadd.f32 %v892_v58, %v3023_v44  ;;  %v2486_v1 = vld [vmem:[#allocation13 + $0x40] sm:$0xff]  ;;  %1867 = vmatpush.bf16.msra.mxu0 %v2478_v29 }
 0x20a   :  { %v966_v9 = vadd.f32 %v3064_v27, %v804_v51  ;;  %v1644_v12 = vmax.f32 %v1390_v11, 0.0  ;;  %1956 = vmatpush.bf16.msra.mxu1 %v2486_v1 }
 0x20b   :  { %v967_v24 = vadd.f32 %v3066_v38, %v893_v42 }
 0x20c   :  { %v1030_v63 = vmax.f32 %v966_v9, 0.0 }
 0x20d   :  { %v1302_v53 = vpop.f32.mrf.mxu0  ;;  %v1031_v18 = vmax.f32 %v967_v24, 0.0 }
 0x20e   :  { %v1303_v50 = vadd.f32 %v1302_v53, %v3164_v54  ;;  %v1391_v57 = vpop.f32.mrf.mxu1 }
 0x20f   :  { %v805_v60 = vpop.f32.mrf.mxu2 }
 0x210   :  { %v1392_v35 = vadd.f32 %v1391_v57, %v1303_v50  ;;  %v806_v20 = vadd.f32 %v805_v60, %v3029_v2  ;;  %v894_v55 = vpop.f32.mrf.mxu3 }
 0x211   :  { %v895_v49 = vadd.f32 %v894_v55, %v3031_v4 }
 0x212   :  { %v1646_v13 = vmax.f32 %v1392_v35, 0.0  ;;  %v968_v39 = vadd.f32 %v3064_v27, %v806_v20 }
 0x213   :  { %v969_v44 = vadd.f32 %v3066_v38, %v895_v49 }
 0x214   :  { %v1032_v5 = vmax.f32 %v968_v39, 0.0  ;;  %1487 = vmatmul.bf16.gmra.mxu2 %v3123_v52  ;;  %v3246_v7 = vpack.c.bf16 %v1646_v13, %v1644_v12 }
 0x215   :  { %v1033_v6 = vmax.f32 %v969_v44, 0.0  ;;  %1576 = vmatmul.bf16.gmra.mxu3 %v3125_v22  ;;  %v1305_v2 = vpop.f32.mrf.mxu0 }
 0x216   :  { %v1306_v40 = vadd.f32 %v1305_v2, %v3164_v54  ;;  %v1394_v4 = vpop.f32.mrf.mxu1  ;;  %v3250_v43 = vpack.c.bf16 %v1032_v5, %v1030_v63 }
 0x217   :  { %v808_v3 = vpop.f32.mrf.mxu2  ;;  %v3252_v37 = vpack.c.bf16 %v1033_v6, %v1031_v18 }
 0x218   :  { %v1395_v30 = vadd.f32 %v1394_v4, %v1306_v40  ;;  %v897_v26 = vpop.f32.mrf.mxu3  ;;  %1344 = vmatmul.bf16.gmra.mxu0 %v3250_v43  ;;  %v809_v52 = vadd.f32 %v808_v3, %v3035_v41 }
 0x219   :  { %1433 = vmatmul.bf16.gmra.mxu1 %v3252_v37  ;;  %v898_v61 = vadd.f32 %v897_v26, %v3037_v14 }
 0x21a   :  { %v970_v42 = vadd.f32 %v3064_v27, %v809_v52  ;;  %v1648_v14 = vmax.f32 %v1395_v30, 0.0 }
 0x21b   :  { %v971_v60 = vadd.f32 %v3066_v38, %v898_v61 }
 0x21c   :  { %v1034_v55 = vmax.f32 %v970_v42, 0.0 }
 0x21d   :  { %v1307_v22 = vpop.f32.mrf.mxu0  ;;  %v1035_v12 = vmax.f32 %v971_v60, 0.0 }
 0x21e   :  { %v1308_v11 = vadd.f32 %v1307_v22, %v3164_v54  ;;  %v1396_v58 = vpop.f32.mrf.mxu1 }
 0x21f   :  { %v810_v51 = vpop.f32.mrf.mxu2 }
 0x220   :  { %v1397_v53 = vadd.f32 %v1396_v58, %v1308_v11  ;;  %v811_v50 = vadd.f32 %v810_v51, %v3039_v16  ;;  %v899_v57 = vpop.f32.mrf.mxu3 }
 0x221   :  { %v900_v41 = vadd.f32 %v899_v57, %v3041_v56 }
 0x222   :  { %v1650_v9 = vmax.f32 %v1397_v53, 0.0  ;;  %v972_v35 = vadd.f32 %v3064_v27, %v811_v50 }
 0x223   :  { %v973_v20 = vadd.f32 %v3066_v38, %v900_v41 }
 0x224   :  { %v1036_v24 = vmax.f32 %v972_v35, 0.0  ;;  %1492 = vmatmul.bf16.gmra.mxu2 %v3133_v23  ;;  %v3266_v49 = vpack.c.bf16 %v1650_v9, %v1648_v14 }
 0x225   :  { %v1037_v13 = vmax.f32 %v973_v20, 0.0  ;;  %1581 = vmatmul.bf16.gmra.mxu3 %v3135_v0  ;;  %v1310_v16 = vpop.f32.mrf.mxu0  ;;  %v3473_v20 = vld [vmem:[#allocation22_spill] sm:$0xff] }
 0x226   :  { %v1311_v39 = vadd.f32 %v1310_v16, %v3164_v54  ;;  %v1399_v56 = vpop.f32.mrf.mxu1  ;;  %v3270_v44 = vpack.c.bf16 %v1036_v24, %v1034_v55 }
 0x227   :  { %v813_v63 = vpop.f32.mrf.mxu2  ;;  %v3272_v5 = vpack.c.bf16 %v1037_v13, %v1035_v12 }
 0x228   :  { %v1400_v18 = vadd.f32 %v1399_v56, %v1311_v39  ;;  %v902_v6 = vpop.f32.mrf.mxu3  ;;  %1349 = vmatmul.bf16.gmra.mxu0 %v3270_v44  ;;  %v814_v23 = vadd.f32 %v813_v63, %v3045_v32  ;;  %v3474_v56 = vld [vmem:[#allocation23_spill] sm:$0xff] }
 0x229   :  { %1438 = vmatmul.bf16.gmra.mxu1 %v3272_v5  ;;  %v903_v2 = vadd.f32 %v902_v6, %v3047_v34 }
 0x22a   :  { %v974_v30 = vadd.f32 %v3064_v27, %v814_v23  ;;  %v1652_v1 = vmax.f32 %v1400_v18, 0.0  ;;  %v3475_v23 = vld [vmem:[#allocation24_spill] sm:$0xff] }
 0x22b   :  { %v975_v22 = vadd.f32 %v3066_v38, %v903_v2 }
 0x22c   :  { %v1038_v58 = vmax.f32 %v974_v30, 0.0 }
 0x22d   :  { %v1312_v0 = vpop.f32.mrf.mxu0  ;;  %v1039_v53 = vmax.f32 %v975_v22, 0.0 }
 0x22e   :  { %v1313_v40 = vadd.f32 %v1312_v0, %v3164_v54  ;;  %v1401_v4 = vpop.f32.mrf.mxu1 }
 0x22f   :  { %v815_v3 = vpop.f32.mrf.mxu2 }
 0x230   :  { %v1402_v26 = vadd.f32 %v1401_v4, %v1313_v40  ;;  %v816_v52 = vadd.f32 %v815_v3, %v3049_v19  ;;  %v904_v61 = vpop.f32.mrf.mxu3 }
 0x231   :  { %v905_v29 = vadd.f32 %v904_v61, %v3051_v15 }
 0x232   :  { %v1654_v11 = vmax.f32 %v1402_v26, 0.0  ;;  %v976_v32 = vadd.f32 %v3064_v27, %v816_v52 }
 0x233   :  { %v977_v34 = vadd.f32 %v3066_v38, %v905_v29 }
 0x234   :  { %v1040_v51 = vmax.f32 %v976_v32, 0.0  ;;  %1497 = vmatmul.bf16.gmra.mxu2 %v3145_v36  ;;  %v3286_v42 = vpack.c.bf16 %v1654_v11, %v1652_v1 }
 0x235   :  { %v1041_v50 = vmax.f32 %v977_v34, 0.0  ;;  %1586 = vmatmul.bf16.gmra.mxu3 %v3147_v47  ;;  %v1315_v19 = vpop.f32.mrf.mxu0  ;;  %v3315_v34 = vperm.slane %v3156_v46, 1 }
 0x236   :  { %v1316_v57 = vadd.f32 %v1315_v19, %v3164_v54  ;;  %v1404_v15 = vpop.f32.mrf.mxu1  ;;  %v3290_v60 = vpack.c.bf16 %v1040_v51, %v1038_v58 }
 0x237   :  { %v818_v41 = vpop.f32.mrf.mxu2  ;;  %v3292_v14 = vpack.c.bf16 %v1041_v50, %v1039_v53 }
 0x238   :  { %v1405_v9 = vadd.f32 %v1404_v15, %v1316_v57  ;;  %v907_v35 = vpop.f32.mrf.mxu3  ;;  %1354 = vmatmul.bf16.gmra.mxu0 %v3290_v60  ;;  %v819_v36 = vadd.f32 %v818_v41, %v3053_v59 }
 0x239   :  { %1443 = vmatmul.bf16.gmra.mxu1 %v3292_v14  ;;  %v908_v55 = vadd.f32 %v907_v35, %v3473_v20 }
 0x23a   :  { %v978_v16 = vadd.f32 %v3064_v27, %v819_v36  ;;  %v1656_v0 = vmax.f32 %v1405_v9, 0.0 }
 0x23b   :  { %v979_v6 = vadd.f32 %v3066_v38, %v908_v55 }
 0x23c   :  { %v1042_v3 = vmax.f32 %v978_v16, 0.0 }
 0x23d   :  { %v1317_v47 = vpop.f32.mrf.mxu0  ;;  %v1043_v52 = vmax.f32 %v979_v6, 0.0 }
 0x23e   :  { %v1318_v24 = vadd.f32 %v1317_v47, %v3164_v54  ;;  %v1406_v12 = vpop.f32.mrf.mxu1 }
 0x23f   :  { %v820_v13 = vpop.f32.mrf.mxu2 }
 0x240   :  { %v1407_v39 = vadd.f32 %v1406_v12, %v1318_v24  ;;  %v821_v63 = vadd.f32 %v820_v13, %v3474_v56  ;;  %v909_v18 = vpop.f32.mrf.mxu3 }
 0x241   :  { %v910_v2 = vadd.f32 %v909_v18, %v3475_v23 }
 0x242   :  { %v1658_v40 = vmax.f32 %v1407_v39, 0.0  ;;  %v980_v59 = vadd.f32 %v3064_v27, %v821_v63 }
 0x243   :  { %v981_v4 = vadd.f32 %v3066_v38, %v910_v2 }
 0x244   :  { %v1044_v30 = vmax.f32 %v980_v59, 0.0  ;;  %1502 = vmatmul.bf16.gmra.mxu2 %v3170_v8  ;;  %v3306_v26 = vpack.c.bf16 %v1658_v40, %v1656_v0 }
 0x245   :  { %v1045_v61 = vmax.f32 %v981_v4, 0.0  ;;  %1591 = vmatmul.bf16.gmra.mxu3 %v3172_v31  ;;  %v1320_v22 = vpop.f32.mrf.mxu0 }
 0x246   :  { %v1321_v29 = vadd.f32 %v1320_v22, %v3164_v54  ;;  %v1409_v1 = vpop.f32.mrf.mxu1  ;;  %v3310_v11 = vpack.c.bf16 %v1044_v30, %v1042_v3 }
 0x247   :  { %v1463_v32 = vpop.f32.mrf.mxu2  ;;  %v3312_v27 = vpack.c.bf16 %v1045_v61, %v1043_v52 }
 0x248   :  { %v1410_v38 = vadd.f32 %v1409_v1, %v1321_v29  ;;  %v1552_v8 = vpop.f32.mrf.mxu3  ;;  %1359 = vmatmul.bf16.gmra.mxu0 %v3310_v11  ;;  %v1464_v31 = vadd.f32 %v1463_v32, %v3315_v34 }
 0x249   :  { %1448 = vmatmul.bf16.gmra.mxu1 %v3312_v27 }
 0x24a   :  { %v1553_v19 = vadd.f32 %v1552_v8, %v1464_v31  ;;  %v1660_v9 = vmax.f32 %v1410_v38, 0.0 }
 0x24c   :  { %v1633_v36 = vmax.f32 %v1553_v19, 0.0 }
 0x24d   :  { %v1322_v58 = vpop.f32.mrf.mxu0 }
 0x24e   :  { %v1323_v51 = vadd.f32 %v1322_v58, %v3164_v54  ;;  %v1411_v53 = vpop.f32.mrf.mxu1 }
 0x24f   :  { %v1465_v50 = vpop.f32.mrf.mxu2 }
 0x250   :  { %v1412_v57 = vadd.f32 %v1411_v53, %v1323_v51  ;;  %v1466_v15 = vadd.f32 %v1465_v50, %v3315_v34  ;;  %v1554_v41 = vpop.f32.mrf.mxu3 }
 0x252   :  { %v1662_v46 = vmax.f32 %v1412_v57, 0.0  ;;  %v1555_v35 = vadd.f32 %v1554_v41, %v1466_v15 }
 0x254   :  { %v1635_v20 = vmax.f32 %v1555_v35, 0.0  ;;  %1507 = vmatmul.bf16.gmra.mxu2 %v3190_v21  ;;  %v3323_v55 = vpack.c.bf16 %v1662_v46, %v1660_v9 }
 0x255   :  { %1596 = vmatmul.bf16.gmra.mxu3 %v3192_v10  ;;  %v1325_v47 = vpop.f32.mrf.mxu0 }
 0x256   :  { %v1697_v24 = vpack.c.bf16 %v1635_v20, %v1633_v36  ;;  %v1326_v12 = vadd.f32 %v1325_v47, %v3164_v54  ;;  %v1414_v13 = vpop.f32.mrf.mxu1 }
 0x257   :  { %v1468_v16 = vpop.f32.mrf.mxu2 }
 0x258   :  { %v1415_v39 = vadd.f32 %v1414_v13, %v1326_v12  ;;  %v1557_v56 = vpop.f32.mrf.mxu3  ;;  %1868 = vmatmul.bf16.vlgmr.msra.gmra.mxu0 %v3185_v17  ;;  %v1469_v63 = vadd.f32 %v1468_v16, %v3315_v34 }
 0x259   :  { %1957 = vmatmul.bf16.vlgmr.msra.gmra.mxu1 %v1697_v24 }
 0x25a   :  { %v1558_v2 = vadd.f32 %v1557_v56, %v1469_v63  ;;  %v1664_v59 = vmax.f32 %v1415_v39, 0.0 }
 0x25c   :  { %v1637_v30 = vmax.f32 %v1558_v2, 0.0 }
 0x25d   :  { %v1327_v18 = vpop.f32.mrf.mxu0 }
 0x25e   :  { %v1328_v21 = vadd.f32 %v1327_v18, %v3164_v54  ;;  %v1416_v6 = vpop.f32.mrf.mxu1 }
 0x25f   :  { %v1470_v23 = vpop.f32.mrf.mxu2 }
 0x260   :  { %v1417_v10 = vadd.f32 %v1416_v6, %v1328_v21  ;;  %v1471_v0 = vadd.f32 %v1470_v23, %v3315_v34  ;;  %v1559_v40 = vpop.f32.mrf.mxu3 }
 0x262   :  { %v1666_v4 = vmax.f32 %v1417_v10, 0.0  ;;  %v1560_v3 = vadd.f32 %v1559_v40, %v1471_v0 }
 0x264   :  { %v1639_v52 = vmax.f32 %v1560_v3, 0.0  ;;  %1512 = vmatmul.bf16.gmra.mxu2 %v3210_v33  ;;  %v3332_v17 = vpack.c.bf16 %v1666_v4, %v1664_v59 }
 0x265   :  { %1601 = vmatmul.bf16.gmra.mxu3 %v3212_v25  ;;  %v1330_v61 = vpop.f32.mrf.mxu0 }
 0x266   :  { %v1331_v22 = vadd.f32 %v1330_v61, %v3164_v54  ;;  %v1419_v29 = vpop.f32.mrf.mxu1  ;;  %v1699_v1 = vpack.c.bf16 %v1639_v52, %v1637_v30 }
 0x267   :  { %v1473_v32 = vpop.f32.mrf.mxu2 }
 0x268   :  { %v1420_v38 = vadd.f32 %v1419_v29, %v1331_v22  ;;  %v1562_v8 = vpop.f32.mrf.mxu3  ;;  %1873 = vmatmul.bf16.gmra.mxu0 %v3206_v28  ;;  %v1474_v31 = vadd.f32 %v1473_v32, %v3315_v34 }
 0x269   :  { %1962 = vmatmul.bf16.gmra.mxu1 %v1699_v1 }
 0x26a   :  { %v1563_v50 = vadd.f32 %v1562_v8, %v1474_v31  ;;  %v1668_v15 = vmax.f32 %v1420_v38, 0.0 }
 0x26c   :  { %v1641_v46 = vmax.f32 %v1563_v50, 0.0 }
 0x26d   :  { %v1332_v58 = vpop.f32.mrf.mxu0 }
 0x26e   :  { %v1333_v33 = vadd.f32 %v1332_v58, %v3164_v54  ;;  %v1421_v51 = vpop.f32.mrf.mxu1 }
 0x26f   :  { %v1475_v53 = vpop.f32.mrf.mxu2 }
 0x270   :  { %v1422_v25 = vadd.f32 %v1421_v51, %v1333_v33  ;;  %v1476_v19 = vadd.f32 %v1475_v53, %v3315_v34  ;;  %v1564_v57 = vpop.f32.mrf.mxu3 }
 0x272   :  { %v1670_v41 = vmax.f32 %v1422_v25, 0.0  ;;  %v1565_v9 = vadd.f32 %v1564_v57, %v1476_v19 }
 0x274   :  { %v1643_v35 = vmax.f32 %v1565_v9, 0.0  ;;  %1517 = vmatmul.bf16.gmra.mxu2 %v3230_v45  ;;  %v3341_v28 = vpack.c.bf16 %v1670_v41, %v1668_v15 }
 0x275   :  { %1606 = vmatmul.bf16.gmra.mxu3 %v3232_v48  ;;  %v1335_v36 = vpop.f32.mrf.mxu0 }
 0x276   :  { %v1336_v20 = vadd.f32 %v1335_v36, %v3164_v54  ;;  %v1424_v47 = vpop.f32.mrf.mxu1  ;;  %v1701_v24 = vpack.c.bf16 %v1643_v35, %v1641_v46 }
 0x277   :  { %v1478_v12 = vpop.f32.mrf.mxu2 }
 0x278   :  { %v1425_v13 = vadd.f32 %v1424_v47, %v1336_v20  ;;  %v1567_v16 = vpop.f32.mrf.mxu3  ;;  %1878 = vmatmul.bf16.gmra.mxu0 %v3226_v62  ;;  %v1479_v39 = vadd.f32 %v1478_v12, %v3315_v34 }
 0x279   :  { %1967 = vmatmul.bf16.gmra.mxu1 %v1701_v24 }
 0x27a   :  { %v1568_v21 = vadd.f32 %v1567_v16, %v1479_v39  ;;  %v1672_v2 = vmax.f32 %v1425_v13, 0.0 }
 0x27c   :  { %v1645_v40 = vmax.f32 %v1568_v21, 0.0 }
 0x27d   :  { %v1337_v56 = vpop.f32.mrf.mxu0 }
 0x27e   :  { %v1338_v45 = vadd.f32 %v1337_v56, %v3164_v54  ;;  %v1426_v63 = vpop.f32.mrf.mxu1 }
 0x27f   :  { %v1480_v18 = vpop.f32.mrf.mxu2 }
 0x280   :  { %v1427_v48 = vadd.f32 %v1426_v63, %v1338_v45  ;;  %v1481_v6 = vadd.f32 %v1480_v18, %v3315_v34  ;;  %v1569_v23 = vpop.f32.mrf.mxu3 }
 0x282   :  { %v1674_v10 = vmax.f32 %v1427_v48, 0.0  ;;  %v1570_v0 = vadd.f32 %v1569_v23, %v1481_v6 }
 0x284   :  { %v1647_v59 = vmax.f32 %v1570_v0, 0.0  ;;  %1522 = vmatmul.bf16.gmra.mxu2 %v3250_v43  ;;  %v3350_v62 = vpack.c.bf16 %v1674_v10, %v1672_v2 }
 0x285   :  { %1611 = vmatmul.bf16.gmra.mxu3 %v3252_v37  ;;  %v1340_v4 = vpop.f32.mrf.mxu0 }
 0x286   :  { %v1341_v3 = vadd.f32 %v1340_v4, %v3164_v54  ;;  %v1429_v30 = vpop.f32.mrf.mxu1  ;;  %v1703_v52 = vpack.c.bf16 %v1647_v59, %v1645_v40 }
 0x287   :  { %v1483_v61 = vpop.f32.mrf.mxu2 }
 0x288   :  { %v1430_v22 = vadd.f32 %v1429_v30, %v1341_v3  ;;  %v1572_v29 = vpop.f32.mrf.mxu3  ;;  %1883 = vmatmul.bf16.gmra.mxu0 %v3246_v7  ;;  %v1484_v1 = vadd.f32 %v1483_v61, %v3315_v34 }
 0x289   :  { %1972 = vmatmul.bf16.gmra.mxu1 %v1703_v52 }
 0x28a   :  { %v1573_v31 = vadd.f32 %v1572_v29, %v1484_v1  ;;  %v1676_v51 = vmax.f32 %v1430_v22, 0.0 }
 0x28c   :  { %v1649_v25 = vmax.f32 %v1573_v31, 0.0 }
 0x28d   :  { %v1342_v32 = vpop.f32.mrf.mxu0 }
 0x28e   :  { %v1343_v43 = vadd.f32 %v1342_v32, %v3164_v54  ;;  %v1431_v38 = vpop.f32.mrf.mxu1 }
 0x28f   :  { %v1485_v8 = vpop.f32.mrf.mxu2 }
 0x290   :  { %v1432_v37 = vadd.f32 %v1431_v38, %v1343_v43  ;;  %v1486_v58 = vadd.f32 %v1485_v8, %v3315_v34  ;;  %v1574_v33 = vpop.f32.mrf.mxu3 }
 0x292   :  { %v1678_v53 = vmax.f32 %v1432_v37, 0.0  ;;  %v1575_v50 = vadd.f32 %v1574_v33, %v1486_v58 }
 0x294   :  { %v1651_v19 = vmax.f32 %v1575_v50, 0.0  ;;  %1527 = vmatmul.bf16.gmra.mxu2 %v3270_v44  ;;  %v3359_v7 = vpack.c.bf16 %v1678_v53, %v1676_v51 }
 0x295   :  { %1616 = vmatmul.bf16.gmra.mxu3 %v3272_v5  ;;  %v1345_v57 = vpop.f32.mrf.mxu0 }
 0x296   :  { %v1705_v15 = vpack.c.bf16 %v1651_v19, %v1649_v25  ;;  %v1346_v41 = vadd.f32 %v1345_v57, %v3164_v54  ;;  %v1434_v9 = vpop.f32.mrf.mxu1 }
 0x297   :  { %v1488_v46 = vpop.f32.mrf.mxu2 }
 0x298   :  { %v1435_v35 = vadd.f32 %v1434_v9, %v1346_v41  ;;  %v1577_v36 = vpop.f32.mrf.mxu3  ;;  %1888 = vmatmul.bf16.gmra.mxu0 %v3266_v49  ;;  %v1489_v20 = vadd.f32 %v1488_v46, %v3315_v34 }
 0x299   :  { %1977 = vmatmul.bf16.gmra.mxu1 %v1705_v15 }
 0x29a   :  { %v1578_v13 = vadd.f32 %v1577_v36, %v1489_v20  ;;  %v1680_v56 = vmax.f32 %v1435_v35, 0.0 }
 0x29c   :  { %v1653_v18 = vmax.f32 %v1578_v13, 0.0 }
 0x29d   :  { %v1347_v47 = vpop.f32.mrf.mxu0 }
 0x29e   :  { %v1348_v44 = vadd.f32 %v1347_v47, %v3164_v54  ;;  %v1436_v24 = vpop.f32.mrf.mxu1 }
 0x29f   :  { %v1490_v12 = vpop.f32.mrf.mxu2 }
 0x2a0   :  { %v1437_v5 = vadd.f32 %v1436_v24, %v1348_v44  ;;  %v1491_v16 = vadd.f32 %v1490_v12, %v3315_v34  ;;  %v1579_v39 = vpop.f32.mrf.mxu3 }
 0x2a2   :  { %v1682_v45 = vmax.f32 %v1437_v5, 0.0  ;;  %v1580_v63 = vadd.f32 %v1579_v39, %v1491_v16 }
 0x2a4   :  { %v1655_v21 = vmax.f32 %v1580_v63, 0.0  ;;  %1532 = vmatmul.bf16.gmra.mxu2 %v3290_v60  ;;  %v3368_v49 = vpack.c.bf16 %v1682_v45, %v1680_v56 }
 0x2a5   :  { %1621 = vmatmul.bf16.gmra.mxu3 %v3292_v14  ;;  %v1350_v48 = vpop.f32.mrf.mxu0 }
 0x2a6   :  { %v1707_v6 = vpack.c.bf16 %v1655_v21, %v1653_v18  ;;  %v1351_v23 = vadd.f32 %v1350_v48, %v3164_v54  ;;  %v1439_v2 = vpop.f32.mrf.mxu1 }
 0x2a7   :  { %v1493_v10 = vpop.f32.mrf.mxu2 }
 0x2a8   :  { %v1440_v0 = vadd.f32 %v1439_v2, %v1351_v23  ;;  %v1582_v40 = vpop.f32.mrf.mxu3  ;;  %1893 = vmatmul.bf16.gmra.mxu0 %v3286_v42  ;;  %v1494_v59 = vadd.f32 %v1493_v10, %v3315_v34 }
 0x2a9   :  { %1982 = vmatmul.bf16.gmra.mxu1 %v1707_v6 }
 0x2aa   :  { %v1583_v52 = vadd.f32 %v1582_v40, %v1494_v59  ;;  %v1684_v29 = vmax.f32 %v1440_v0, 0.0 }
 0x2ac   :  { %v1657_v43 = vmax.f32 %v1583_v52, 0.0 }
 0x2ad   :  { %v1352_v4 = vpop.f32.mrf.mxu0 }
 0x2ae   :  { %v1353_v60 = vadd.f32 %v1352_v4, %v3164_v54  ;;  %v1441_v3 = vpop.f32.mrf.mxu1 }
 0x2af   :  { %v1495_v30 = vpop.f32.mrf.mxu2 }
 0x2b0   :  { %v1442_v14 = vadd.f32 %v1441_v3, %v1353_v60  ;;  %v1496_v61 = vadd.f32 %v1495_v30, %v3315_v34  ;;  %v1584_v22 = vpop.f32.mrf.mxu3 }
 0x2b2   :  { %v1686_v1 = vmax.f32 %v1442_v14, 0.0  ;;  %v1585_v32 = vadd.f32 %v1584_v22, %v1496_v61 }
 0x2b4   :  { %v1659_v38 = vmax.f32 %v1585_v32, 0.0  ;;  %1537 = vmatmul.bf16.gmra.mxu2 %v3310_v11  ;;  %v3377_v42 = vpack.c.bf16 %v1686_v1, %v1684_v29 }
 0x2b5   :  { %1626 = vmatmul.bf16.gmra.mxu3 %v3312_v27  ;;  %v1355_v8 = vpop.f32.mrf.mxu0 }
 0x2b6   :  { %v1709_v31 = vpack.c.bf16 %v1659_v38, %v1657_v43  ;;  %v1356_v37 = vadd.f32 %v1355_v8, %v3164_v54  ;;  %v1444_v58 = vpop.f32.mrf.mxu1 }
 0x2b7   :  { %v1498_v33 = vpop.f32.mrf.mxu2 }
 0x2b8   :  { %v1445_v51 = vadd.f32 %v1444_v58, %v1356_v37  ;;  %v1587_v53 = vpop.f32.mrf.mxu3  ;;  %1898 = vmatmul.bf16.gmra.mxu0 %v3306_v26  ;;  %v1499_v50 = vadd.f32 %v1498_v33, %v3315_v34 }
 0x2b9   :  { %1987 = vmatmul.bf16.gmra.mxu1 %v1709_v31 }
 0x2ba   :  { %v1588_v15 = vadd.f32 %v1587_v53, %v1499_v50  ;;  %v1688_v46 = vmax.f32 %v1445_v51, 0.0 }
 0x2bc   :  { %v1661_v20 = vmax.f32 %v1588_v15, 0.0 }
 0x2bd   :  { %v1357_v25 = vpop.f32.mrf.mxu0 }
 0x2be   :  { %v1358_v11 = vadd.f32 %v1357_v25, %v3164_v54  ;;  %v1446_v19 = vpop.f32.mrf.mxu1 }
 0x2bf   :  { %v1500_v57 = vpop.f32.mrf.mxu2 }
 0x2c0   :  { %v1447_v27 = vadd.f32 %v1446_v19, %v1358_v11  ;;  %v1501_v41 = vadd.f32 %v1500_v57, %v3315_v34  ;;  %v1589_v9 = vpop.f32.mrf.mxu3 }
 0x2c2   :  { %v1690_v35 = vmax.f32 %v1447_v27, 0.0  ;;  %v1590_v36 = vadd.f32 %v1589_v9, %v1501_v41 }
 0x2c4   :  { %v1663_v47 = vmax.f32 %v1590_v36, 0.0  ;;  %v3385_v44 = vpack.c.bf16 %v1690_v35, %v1688_v46 }
 0x2c5   :  { %v1360_v26 = vpop.f32.mrf.mxu0 }
 0x2c6   :  { %v1711_v24 = vpack.c.bf16 %v1663_v47, %v1661_v20  ;;  %v1361_v12 = vadd.f32 %v1360_v26, %v3164_v54  ;;  %v1449_v13 = vpop.f32.mrf.mxu1 }
 0x2c7   :  { %v1503_v5 = vpop.f32.mrf.mxu2 }
 0x2c8   :  { %v1450_v16 = vadd.f32 %v1449_v13, %v1361_v12  ;;  %v1592_v39 = vpop.f32.mrf.mxu3  ;;  %1903 = vmatmul.bf16.gmra.mxu0 %v3323_v55  ;;  %v1504_v56 = vadd.f32 %v1503_v5, %v3315_v34  ;;  %v3395_v55 = vld [vmem:[%s3468_s9] ss:$0 sm:$0xff]  ;;  %s2741_s9 = smov [#allocation15]  }
 0x2c9   :  { %1992 = vmatmul.bf16.gmra.mxu1 %v1711_v24  ;;  %s2075_s4 = sshll.u32 %s2741_s9, 4  ;;  %s2076_s4 = int_to_ptr.vmem [resolvable:$true] %s2075_s4 }
 0x2ca   :  { %v1593_v48 = vadd.f32 %v1592_v39, %v1504_v56  ;;  %v1692_v10 = vmax.f32 %v1450_v16, 0.0 }
 0x2cc   :  { %v1665_v59 = vmax.f32 %v1593_v48, 0.0 }
 0x2cd   :  { %v1362_v45 = vpop.f32.mrf.mxu0 }
 0x2ce   :  { %v1363_v63 = vadd.f32 %v1362_v45, %v3164_v54  ;;  %v1451_v18 = vpop.f32.mrf.mxu1 }
 0x2cf   :  { %v1505_v21 = vpop.f32.mrf.mxu2 }
 0x2d0   :  { %v1452_v6 = vadd.f32 %v1451_v18, %v1363_v63  ;;  %v1506_v23 = vadd.f32 %v1505_v21, %v3315_v34  ;;  %v1594_v2 = vpop.f32.mrf.mxu3 }
 0x2d2   :  { %v1694_v0 = vmax.f32 %v1452_v6, 0.0  ;;  %v1595_v40 = vadd.f32 %v1594_v2, %v1506_v23 }
 0x2d4   :  { %v1667_v4 = vmax.f32 %v1595_v40, 0.0  ;;  %v3397_v60 = vpack.c.bf16 %v1694_v0, %v1692_v10 }
 0x2d5   :  { %v1869_v54 = vpop.f32.mrf.mxu0 }
 0x2d6   :  { %v1713_v3 = vpack.c.bf16 %v1667_v4, %v1665_v59  ;;  %v1870_v30 = vadd.f32 %v3395_v55, %v1869_v54  ;;  %v1958_v52 = vpop.f32.mrf.mxu1 }
 0x2d7   :  { %v1508_v14 = vpop.f32.mrf.mxu2 }
 0x2d8   :  { %v1959_v61 = vadd.f32 %v1958_v52, %v1870_v30  ;;  %v1597_v22 = vpop.f32.mrf.mxu3  ;;  %1908 = vmatmul.bf16.gmra.mxu0 %v3332_v17  ;;  %v1509_v29 = vadd.f32 %v1508_v14, %v3315_v34 }
 0x2d9   :  { %1997 = vmatmul.bf16.gmra.mxu1 %v1713_v3 }
 0x2da   :  { %2039 = vst [vmem:[#allocation15 + $0x100] sm:$0xff] %v1959_v61  ;;  %v1598_v8 = vadd.f32 %v1597_v22, %v1509_v29 }
 0x2dc   :  { %v1669_v51 = vmax.f32 %v1598_v8, 0.0 }
 0x2dd   :  { %v1871_v1 = vpop.f32.mrf.mxu0 }
 0x2de   :  { %v1872_v32 = vadd.f32 %v3395_v55, %v1871_v1  ;;  %v1960_v43 = vpop.f32.mrf.mxu1 }
 0x2df   :  { %v1510_v38 = vpop.f32.mrf.mxu2 }
 0x2e0   :  { %v1961_v31 = vadd.f32 %v1960_v43, %v1872_v32  ;;  %v1511_v37 = vadd.f32 %v1510_v38, %v3315_v34  ;;  %v1599_v58 = vpop.f32.mrf.mxu3 }
 0x2e2   :  { %2040 = vst [vmem:[#allocation15 + $0x108] sm:$0xff] %v1961_v31  ;;  %v1600_v33 = vadd.f32 %v1599_v58, %v1511_v37 }
 0x2e4   :  { %v1671_v53 = vmax.f32 %v1600_v33, 0.0 }
 0x2e5   :  { %v1874_v50 = vpop.f32.mrf.mxu0 }
 0x2e6   :  { %v1715_v17 = vpack.c.bf16 %v1671_v53, %v1669_v51  ;;  %v1875_v25 = vadd.f32 %v3395_v55, %v1874_v50  ;;  %v1963_v11 = vpop.f32.mrf.mxu1 }
 0x2e7   :  { %v1513_v19 = vpop.f32.mrf.mxu2 }
 0x2e8   :  { %v1964_v57 = vadd.f32 %v1963_v11, %v1875_v25  ;;  %v1602_v15 = vpop.f32.mrf.mxu3  ;;  %1913 = vmatmul.bf16.gmra.mxu0 %v3341_v28  ;;  %v1514_v27 = vadd.f32 %v1513_v19, %v3315_v34 }
 0x2e9   :  { %2002 = vmatmul.bf16.gmra.mxu1 %v1715_v17 }
 0x2ea   :  { %2041 = vst [vmem:[#allocation15 + $0x110] sm:$0xff] %v1964_v57  ;;  %v1603_v36 = vadd.f32 %v1602_v15, %v1514_v27 }
 0x2ec   :  { %v1673_v12 = vmax.f32 %v1603_v36, 0.0 }
 0x2ed   :  { %v1876_v41 = vpop.f32.mrf.mxu0 }
 0x2ee   :  { %v1877_v9 = vadd.f32 %v3395_v55, %v1876_v41  ;;  %v1965_v46 = vpop.f32.mrf.mxu1 }
 0x2ef   :  { %v1515_v35 = vpop.f32.mrf.mxu2 }
 0x2f0   :  { %v1966_v20 = vadd.f32 %v1965_v46, %v1877_v9  ;;  %v1516_v47 = vadd.f32 %v1515_v35, %v3315_v34  ;;  %v1604_v26 = vpop.f32.mrf.mxu3 }
 0x2f2   :  { %2042 = vst [vmem:[#allocation15 + $0x118] sm:$0xff] %v1966_v20  ;;  %v1605_v24 = vadd.f32 %v1604_v26, %v1516_v47 }
 0x2f4   :  { %v1675_v13 = vmax.f32 %v1605_v24, 0.0 }
 0x2f5   :  { %v1879_v5 = vpop.f32.mrf.mxu0 }
 0x2f6   :  { %v1717_v28 = vpack.c.bf16 %v1675_v13, %v1673_v12  ;;  %v1880_v16 = vadd.f32 %v3395_v55, %v1879_v5  ;;  %v1968_v39 = vpop.f32.mrf.mxu1 }
 0x2f7   :  { %v1518_v56 = vpop.f32.mrf.mxu2 }
 0x2f8   :  { %v1969_v45 = vadd.f32 %v1968_v39, %v1880_v16  ;;  %v1607_v63 = vpop.f32.mrf.mxu3  ;;  %1918 = vmatmul.bf16.gmra.mxu0 %v3350_v62  ;;  %v1519_v18 = vadd.f32 %v1518_v56, %v3315_v34 }
 0x2f9   :  { %2007 = vmatmul.bf16.gmra.mxu1 %v1717_v28 }
 0x2fa   :  { %2043 = vst [vmem:[#allocation15 + $0x120] sm:$0xff] %v1969_v45  ;;  %v1608_v2 = vadd.f32 %v1607_v63, %v1519_v18 }
 0x2fc   :  { %v1677_v4 = vmax.f32 %v1608_v2, 0.0 }
 0x2fd   :  { %v1881_v21 = vpop.f32.mrf.mxu0 }
 0x2fe   :  { %v1882_v48 = vadd.f32 %v3395_v55, %v1881_v21  ;;  %v1970_v6 = vpop.f32.mrf.mxu1 }
 0x2ff   :  { %v1520_v23 = vpop.f32.mrf.mxu2 }
 0x300   :  { %v1971_v10 = vadd.f32 %v1970_v6, %v1882_v48  ;;  %v1521_v0 = vadd.f32 %v1520_v23, %v3315_v34  ;;  %v1609_v40 = vpop.f32.mrf.mxu3 }
 0x302   :  { %2044 = vst [vmem:[#allocation15 + $0x128] sm:$0xff] %v1971_v10  ;;  %v1610_v59 = vadd.f32 %v1609_v40, %v1521_v0 }
 0x304   :  { %v1679_v54 = vmax.f32 %v1610_v59, 0.0 }
 0x305   :  { %v1884_v3 = vpop.f32.mrf.mxu0 }
 0x306   :  { %v1719_v62 = vpack.c.bf16 %v1679_v54, %v1677_v4  ;;  %v1885_v30 = vadd.f32 %v3395_v55, %v1884_v3  ;;  %v1973_v52 = vpop.f32.mrf.mxu1 }
 0x307   :  { %v1523_v14 = vpop.f32.mrf.mxu2 }
 0x308   :  { %v1974_v61 = vadd.f32 %v1973_v52, %v1885_v30  ;;  %v1612_v22 = vpop.f32.mrf.mxu3  ;;  %1923 = vmatmul.bf16.gmra.mxu0 %v3359_v7  ;;  %v1524_v29 = vadd.f32 %v1523_v14, %v3315_v34 }
 0x309   :  { %2012 = vmatmul.bf16.gmra.mxu1 %v1719_v62 }
 0x30a   :  { %2045 = vst [vmem:[#allocation15 + $0x130] sm:$0xff] %v1974_v61  ;;  %v1613_v8 = vadd.f32 %v1612_v22, %v1524_v29 }
 0x30c   :  { %v1681_v51 = vmax.f32 %v1613_v8, 0.0 }
 0x30d   :  { %v1886_v1 = vpop.f32.mrf.mxu0 }
 0x30e   :  { %v1887_v32 = vadd.f32 %v3395_v55, %v1886_v1  ;;  %v1975_v43 = vpop.f32.mrf.mxu1 }
 0x30f   :  { %v1525_v38 = vpop.f32.mrf.mxu2 }
 0x310   :  { %v1976_v31 = vadd.f32 %v1975_v43, %v1887_v32  ;;  %v1526_v37 = vadd.f32 %v1525_v38, %v3315_v34  ;;  %v1614_v58 = vpop.f32.mrf.mxu3 }
 0x312   :  { %2046 = vst [vmem:[#allocation15 + $0x138] sm:$0xff] %v1976_v31  ;;  %v1615_v33 = vadd.f32 %v1614_v58, %v1526_v37 }
 0x314   :  { %v1683_v53 = vmax.f32 %v1615_v33, 0.0 }
 0x315   :  { %v1889_v50 = vpop.f32.mrf.mxu0 }
 0x316   :  { %v1721_v7 = vpack.c.bf16 %v1683_v53, %v1681_v51  ;;  %v1890_v17 = vadd.f32 %v3395_v55, %v1889_v50  ;;  %v1978_v25 = vpop.f32.mrf.mxu1 }
 0x317   :  { %v1528_v11 = vpop.f32.mrf.mxu2 }
 0x318   :  { %v1979_v19 = vadd.f32 %v1978_v25, %v1890_v17  ;;  %v1617_v57 = vpop.f32.mrf.mxu3  ;;  %1928 = vmatmul.bf16.gmra.mxu0 %v3368_v49  ;;  %v1529_v15 = vadd.f32 %v1528_v11, %v3315_v34 }
 0x319   :  { %2017 = vmatmul.bf16.gmra.mxu1 %v1721_v7 }
 0x31a   :  { %2047 = vst [vmem:[#allocation15 + $0x140] sm:$0xff] %v1979_v19  ;;  %v1618_v35 = vadd.f32 %v1617_v57, %v1529_v15 }
 0x31c   :  { %v1685_v24 = vmax.f32 %v1618_v35, 0.0 }
 0x31d   :  { %v1891_v27 = vpop.f32.mrf.mxu0 }
 0x31e   :  { %v1892_v41 = vadd.f32 %v3395_v55, %v1891_v27  ;;  %v1980_v9 = vpop.f32.mrf.mxu1 }
 0x31f   :  { %v1530_v46 = vpop.f32.mrf.mxu2 }
 0x320   :  { %v1981_v36 = vadd.f32 %v1980_v9, %v1892_v41  ;;  %v1531_v20 = vadd.f32 %v1530_v46, %v3315_v34  ;;  %v1619_v47 = vpop.f32.mrf.mxu3 }
 0x322   :  { %2048 = vst [vmem:[#allocation15 + $0x148] sm:$0xff] %v1981_v36  ;;  %v1620_v26 = vadd.f32 %v1619_v47, %v1531_v20 }
 0x324   :  { %v1687_v12 = vmax.f32 %v1620_v26, 0.0 }
 0x325   :  { %v1894_v13 = vpop.f32.mrf.mxu0 }
 0x326   :  { %v1723_v49 = vpack.c.bf16 %v1687_v12, %v1685_v24  ;;  %v1895_v5 = vadd.f32 %v3395_v55, %v1894_v13  ;;  %v1983_v28 = vpop.f32.mrf.mxu1 }
 0x327   :  { %v1533_v16 = vpop.f32.mrf.mxu2 }
 0x328   :  { %v1984_v39 = vadd.f32 %v1983_v28, %v1895_v5  ;;  %v1622_v56 = vpop.f32.mrf.mxu3  ;;  %1933 = vmatmul.bf16.gmra.mxu0 %v3377_v42  ;;  %v1534_v45 = vadd.f32 %v1533_v16, %v3315_v34 }
 0x329   :  { %2022 = vmatmul.bf16.gmra.mxu1 %v1723_v49 }
 0x32a   :  { %2049 = vst [vmem:[#allocation15 + $0x150] sm:$0xff] %v1984_v39  ;;  %v1623_v6 = vadd.f32 %v1622_v56, %v1534_v45 }
 0x32c   :  { %v1689_v40 = vmax.f32 %v1623_v6, 0.0 }
 0x32d   :  { %v1896_v63 = vpop.f32.mrf.mxu0 }
 0x32e   :  { %v1897_v18 = vadd.f32 %v3395_v55, %v1896_v63  ;;  %v1985_v21 = vpop.f32.mrf.mxu1 }
 0x32f   :  { %v1535_v48 = vpop.f32.mrf.mxu2 }
 0x330   :  { %v1986_v23 = vadd.f32 %v1985_v21, %v1897_v18  ;;  %v1536_v2 = vadd.f32 %v1535_v48, %v3315_v34  ;;  %v1624_v10 = vpop.f32.mrf.mxu3 }
 0x332   :  { %2050 = vst [vmem:[#allocation15 + $0x158] sm:$0xff] %v1986_v23  ;;  %v1625_v0 = vadd.f32 %v1624_v10, %v1536_v2 }
 0x334   :  { %v1691_v59 = vmax.f32 %v1625_v0, 0.0 }
 0x335   :  { %v1899_v4 = vpop.f32.mrf.mxu0 }
 0x336   :  { %v1725_v42 = vpack.c.bf16 %v1691_v59, %v1689_v40  ;;  %v1900_v54 = vadd.f32 %v3395_v55, %v1899_v4  ;;  %v1988_v3 = vpop.f32.mrf.mxu1 }
 0x337   :  { %v1538_v62 = vpop.f32.mrf.mxu2 }
 0x338   :  { %v1989_v30 = vadd.f32 %v1988_v3, %v1900_v54  ;;  %v1627_v52 = vpop.f32.mrf.mxu3  ;;  %1938 = vmatmul.bf16.gmra.mxu0 %v3385_v44  ;;  %v1539_v14 = vadd.f32 %v1538_v62, %v3315_v34 }
 0x339   :  { %2027 = vmatmul.bf16.gmra.mxu1 %v1725_v42 }
 0x33a   :  { %2051 = vst [vmem:[#allocation15 + $0x160] sm:$0xff] %v1989_v30  ;;  %v1628_v32 = vadd.f32 %v1627_v52, %v1539_v14 }
 0x33c   :  { %v1693_v37 = vmax.f32 %v1628_v32, 0.0 }
 0x33d   :  { %v1901_v61 = vpop.f32.mrf.mxu0 }
 0x33e   :  { %v1902_v22 = vadd.f32 %v3395_v55, %v1901_v61  ;;  %v1990_v29 = vpop.f32.mrf.mxu1 }
 0x33f   :  { %v1540_v1 = vpop.f32.mrf.mxu2 }
 0x340   :  { %v1991_v43 = vadd.f32 %v1990_v29, %v1902_v22  ;;  %v1541_v38 = vadd.f32 %v1540_v1, %v3315_v34  ;;  %v1629_v8 = vpop.f32.mrf.mxu3 }
 0x342   :  { %2052 = vst [vmem:[#allocation15 + $0x168] sm:$0xff] %v1991_v43  ;;  %v1630_v31 = vadd.f32 %v1629_v8, %v1541_v38 }
 0x344   :  { %v1695_v58 = vmax.f32 %v1630_v31, 0.0 }
 0x345   :  { %v1904_v33 = vpop.f32.mrf.mxu0 }
 0x346   :  { %v1727_v44 = vpack.c.bf16 %v1695_v58, %v1693_v37  ;;  %v1905_v51 = vadd.f32 %v3395_v55, %v1904_v33  ;;  %v1993_v53 = vpop.f32.mrf.mxu1 }
 0x348   :  { %v1994_v50 = vadd.f32 %v1993_v53, %v1905_v51  ;;  %1943 = vmatmul.bf16.gmra.mxu0 %v3397_v60 }
 0x349   :  { %2032 = vmatmul.bf16.gmra.mxu1 %v1727_v44 }
 0x34a   :  { %2053 = vst [vmem:[#allocation15 + $0x170] sm:$0xff] %v1994_v50 }
 0x34d   :  { %v1906_v7 = vpop.f32.mrf.mxu0 }
 0x34e   :  { %v1907_v17 = vadd.f32 %v3395_v55, %v1906_v7  ;;  %v1995_v25 = vpop.f32.mrf.mxu1 }
 0x350   :  { %v1996_v34 = vadd.f32 %v1995_v25, %v1907_v17 }
 0x352   :  { %2054 = vst [vmem:[#allocation15 + $0x178] sm:$0xff] %v1996_v34 }
 0x355   :  { %v1909_v11 = vpop.f32.mrf.mxu0 }
 0x356   :  { %v1910_v19 = vadd.f32 %v3395_v55, %v1909_v11  ;;  %v1998_v57 = vpop.f32.mrf.mxu1 }
 0x358   :  { %v1999_v15 = vadd.f32 %v1998_v57, %v1910_v19 }
 0x35a   :  { %2055 = vst [vmem:[#allocation15 + $0x180] sm:$0xff] %v1999_v15 }
 0x35d   :  { %v1911_v27 = vpop.f32.mrf.mxu0 }
 0x35e   :  { %v1912_v41 = vadd.f32 %v3395_v55, %v1911_v27  ;;  %v2000_v9 = vpop.f32.mrf.mxu1 }
 0x360   :  { %v2001_v46 = vadd.f32 %v2000_v9, %v1912_v41 }
 0x362   :  { %2056 = vst [vmem:[#allocation15 + $0x188] sm:$0xff] %v2001_v46 }
 0x365   :  { %v1914_v60 = vpop.f32.mrf.mxu0 }
 0x366   :  { %v1915_v35 = vadd.f32 %v3395_v55, %v1914_v60  ;;  %v2003_v36 = vpop.f32.mrf.mxu1 }
 0x368   :  { %v2004_v20 = vadd.f32 %v2003_v36, %v1915_v35 }
 0x36a   :  { %2057 = vst [vmem:[#allocation15 + $0x190] sm:$0xff] %v2004_v20 }
 0x36d   :  { %v1916_v47 = vpop.f32.mrf.mxu0 }
 0x36e   :  { %v1917_v26 = vadd.f32 %v3395_v55, %v1916_v47  ;;  %v2005_v24 = vpop.f32.mrf.mxu1 }
 0x370   :  { %v2006_v12 = vadd.f32 %v2005_v24, %v1917_v26 }
 0x372   :  { %2058 = vst [vmem:[#allocation15 + $0x198] sm:$0xff] %v2006_v12 }
 0x375   :  { %v1919_v13 = vpop.f32.mrf.mxu0 }
 0x376   :  { %v1920_v49 = vadd.f32 %v3395_v55, %v1919_v13  ;;  %v2008_v5 = vpop.f32.mrf.mxu1 }
 0x378   :  { %v2009_v28 = vadd.f32 %v2008_v5, %v1920_v49 }
 0x37a   :  { %2059 = vst [vmem:[#allocation15 + $0x1a0] sm:$0xff] %v2009_v28 }
 0x37d   :  { %v1921_v16 = vpop.f32.mrf.mxu0 }
 0x37e   :  { %v1922_v39 = vadd.f32 %v3395_v55, %v1921_v16  ;;  %v2010_v56 = vpop.f32.mrf.mxu1 }
 0x380   :  { %v2011_v45 = vadd.f32 %v2010_v56, %v1922_v39 }
 0x382   :  { %2060 = vst [vmem:[#allocation15 + $0x1a8] sm:$0xff] %v2011_v45 }
 0x385   :  { %v1924_v63 = vpop.f32.mrf.mxu0 }
 0x386   :  { %v1925_v18 = vadd.f32 %v3395_v55, %v1924_v63  ;;  %v2013_v21 = vpop.f32.mrf.mxu1 }
 0x388   :  { %v2014_v48 = vadd.f32 %v2013_v21, %v1925_v18 }
 0x38a   :  { %2061 = vst [vmem:[#allocation15 + $0x1b0] sm:$0xff] %v2014_v48 }
 0x38d   :  { %v1926_v6 = vpop.f32.mrf.mxu0 }
 0x38e   :  { %v1927_v23 = vadd.f32 %v3395_v55, %v1926_v6  ;;  %v2015_v2 = vpop.f32.mrf.mxu1 }
 0x390   :  { %v2016_v10 = vadd.f32 %v2015_v2, %v1927_v23 }
 0x392   :  { %2062 = vst [vmem:[#allocation15 + $0x1b8] sm:$0xff] %v2016_v10 }
 0x395   :  { %v1929_v0 = vpop.f32.mrf.mxu0 }
 0x396   :  { %v1930_v40 = vadd.f32 %v3395_v55, %v1929_v0  ;;  %v2018_v59 = vpop.f32.mrf.mxu1 }
 0x398   :  { %v2019_v4 = vadd.f32 %v2018_v59, %v1930_v40 }
 0x39a   :  { %2063 = vst [vmem:[#allocation15 + $0x1c0] sm:$0xff] %v2019_v4 }
 0x39d   :  { %v1931_v42 = vpop.f32.mrf.mxu0 }
 0x39e   :  { %v1932_v54 = vadd.f32 %v3395_v55, %v1931_v42  ;;  %v2020_v3 = vpop.f32.mrf.mxu1 }
 0x3a0   :  { %v2021_v62 = vadd.f32 %v2020_v3, %v1932_v54 }
 0x3a2   :  { %2064 = vst [vmem:[#allocation15 + $0x1c8] sm:$0xff] %v2021_v62 }
 0x3a5   :  { %v1934_v30 = vpop.f32.mrf.mxu0 }
 0x3a6   :  { %v1935_v52 = vadd.f32 %v3395_v55, %v1934_v30  ;;  %v2023_v14 = vpop.f32.mrf.mxu1 }
 0x3a8   :  { %v2024_v61 = vadd.f32 %v2023_v14, %v1935_v52 }
 0x3aa   :  { %2065 = vst [vmem:[#allocation15 + $0x1d0] sm:$0xff] %v2024_v61 }
 0x3ad   :  { %v1936_v22 = vpop.f32.mrf.mxu0 }
 0x3ae   :  { %v1937_v29 = vadd.f32 %v3395_v55, %v1936_v22  ;;  %v2025_v1 = vpop.f32.mrf.mxu1 }
 0x3b0   :  { %v2026_v32 = vadd.f32 %v2025_v1, %v1937_v29 }
 0x3b2   :  { %2066 = vst [vmem:[#allocation15 + $0x1d8] sm:$0xff] %v2026_v32 }
 0x3b5   :  { %v1939_v43 = vpop.f32.mrf.mxu0 }
 0x3b6   :  { %v1940_v38 = vadd.f32 %v3395_v55, %v1939_v43  ;;  %v2028_v8 = vpop.f32.mrf.mxu1 }
 0x3b8   :  { %v2029_v31 = vadd.f32 %v2028_v8, %v1940_v38 }
 0x3ba   :  { %2067 = vst [vmem:[#allocation15 + $0x1e0] sm:$0xff] %v2029_v31 }
 0x3bd   :  { %v1941_v37 = vpop.f32.mrf.mxu0 }
 0x3be   :  { %v1942_v58 = vadd.f32 %v3395_v55, %v1941_v37  ;;  %v2030_v33 = vpop.f32.mrf.mxu1 }
 0x3c0   :  { %v2031_v44 = vadd.f32 %v2030_v33, %v1942_v58 }
 0x3c2   :  { %2068 = vst [vmem:[#allocation15 + $0x1e8] sm:$0xff] %v2031_v44 }
 0x3c5   :  { %v1944_v51 = vpop.f32.mrf.mxu0 }
 0x3c6   :  { %v1945_v53 = vadd.f32 %v3395_v55, %v1944_v51  ;;  %v2033_v50 = vpop.f32.mrf.mxu1 }
 0x3c8   :  { %v2034_v7 = vadd.f32 %v2033_v50, %v1945_v53 }
 0x3ca   :  { %2069 = vst [vmem:[#allocation15 + $0x1f0] sm:$0xff] %v2034_v7 }
 0x3cd   :  { %v1946_v17 = vpop.f32.mrf.mxu0 }
 0x3ce   :  { %v1947_v25 = vadd.f32 %v3395_v55, %v1946_v17  ;;  %v2035_v34 = vpop.f32.mrf.mxu1 }
 0x3d0   :  { %v2036_v11 = vadd.f32 %v2035_v34, %v1947_v25 }
 0x3d2   :  { %2070 = vst [vmem:[#allocation15 + $0x1f8] sm:$0xff] %v2036_v11 }
 0x3d3   :  { %2083 = dma.vmem_to_hbm [thread:$0]  %s2076_s4, 8192, %s2078_s12, [#allocation6], %s2732_s24, %s2732_s24, %s2733_s25  }
 0x3d4   :  { %2728 = dma.done.wait [#allocation6], 8192  }
 0x3d5   :  { %2729 = vsyncadd [#allocation6], 4294959104 }
 0x3d6   :  { %2088 = vsyncpa [#allocation5], 1 }
 0x3d7   :  { %2089 = vsyncpa [#allocation8], 1 }
 0x3d8   :  { %2090 = vsyncpa [#allocation11], 1 }
 0x3d9   :  { %2091 = vsyncpa [#allocation14], 1 }
 0x3da   :  { %2092 = vsyncpa [#allocation6], 1 }

</bundles_post_ra>
